<compile_context>
chip_gen: v7x
topology: tpu7x:2x2x1
jax: 0.10.0
libtpu: 0.0.40
codegen_flags: <defaults>
</compile_context>

<pallas_src>
import functools

import jax
import jax.numpy as jnp
from jax.experimental import pallas as pl
from jax.experimental.pallas import tpu as pltpu

NEG_SLOPE = 0.01      # PyTorch nn.LeakyReLU default
_LANE = 128


def _round_up(d, m):
    return ((d + m - 1) // m) * m


def _pad_dim(d):
    return max(_LANE, _round_up(d, _LANE))


def _pick_tm(batch):
    """Batch-tile size (static under jit).

    batch <= 256 : single small tile (latency-bound; avoid padding 2 -> 256).
    batch  > 256 : tiles that are multiples of 256 (full MXU), capped at 1024
                   (v5e VMEM headroom), sized so the grid length stays >= 2
                   (both v7x TensorCores busy).
    """
    if batch <= 256:
        return max(8, _round_up(batch, 8))
    return min(1024, _round_up(pl.cdiv(batch, 2), 256))


# ----------------------------- kernel ---------------------------------------


def _discriminator_kernel(x_ref,
                          w1_ref, b1_ref,
                          w2_ref, b2_ref,
                          w3_ref, b3_ref,
                          w4_ref, b4_ref,
                          w5_ref, b5_ref,
                          o_ref,
                          *, out_dim):
    def linear(h_bf16, w_ref, b_ref):
        # bf16 x bf16 -> f32 accumulation on the MXU, f32 bias add.
        return jnp.dot(h_bf16, w_ref[...],
                       preferred_element_type=jnp.float32) + b_ref[...]

    def leaky_relu_bf16(h_f32):
        # elementwise in f32 (safe on v5e VPU too), cast to bf16 for the MXU.
        return jnp.where(h_f32 > 0, h_f32, NEG_SLOPE * h_f32).astype(jnp.bfloat16)

    x = x_ref[...].astype(jnp.bfloat16)            # in-kernel cast, K = 784
    h = leaky_relu_bf16(linear(x, w1_ref, b1_ref))
    h = leaky_relu_bf16(linear(h, w2_ref, b2_ref))
    h = leaky_relu_bf16(linear(h, w3_ref, b3_ref))
    h = leaky_relu_bf16(linear(h, w4_ref, b4_ref))
    z = linear(h, w5_ref, b5_ref)                  # (TM, 128) f32; cols >= out_dim are padding
    # Only the real logit column(s) are sigmoid-ed and written back:
    # TM*out_dim*4 B per tile instead of TM*128*4 B (128x less HBM writeback).
    o_ref[...] = jax.nn.sigmoid(z[:, :out_dim])


# ----------------------------- wrapper ---------------------------------------


def prepare_params(params):
    """Zero-pad hidden/output dims to lane multiples and cast weights to bf16.

    The first layer's input dim stays 784 (x is fed to the kernel unpadded);
    every other dim is padded to a multiple of 128.  Zero padding is exact:
    padded hidden columns stay 0 through bias-add and LeakyReLU and contribute
    nothing downstream.  Done once; reuse the result across calls.
    """
    prepped = []
    for li, (w, b) in enumerate(params):
        d_in, d_out = w.shape
        dip = d_in if li == 0 else _pad_dim(d_in)
        dop = _pad_dim(d_out)
        wp = jnp.zeros((dip, dop), jnp.bfloat16).at[:d_in, :d_out].set(
            w.astype(jnp.bfloat16))
        bp = jnp.zeros((1, dop), jnp.float32).at[:, :d_out].set(
            b.astype(jnp.float32))
        prepped.append((wp, bp))
    return prepped


@functools.partial(jax.jit, static_argnames=("out_dim",))
def discriminator_forward(x, prepped_params, out_dim=1):
    """x: [B, 784] float32 (unpadded). prepped_params: output of prepare_params()."""
    B, D = x.shape
    TM = _pick_tm(B)
    grid = (pl.cdiv(B, TM),)   # ragged last block handled by Pallas edge masking

    flat = []
    # x keeps the full feature dim (full-dim blocks are exempt from the 128
    # rule); only the batch axis is tiled/pipelined.
    in_specs = [pl.BlockSpec((TM, D), lambda i: (i, 0))]
    for w, b in prepped_params:
        flat.extend([w, b])
        # Constant block index -> weights/biases stay VMEM-resident across all
        # batch-grid steps (no re-DMA per tile).
        in_specs.append(pl.BlockSpec(w.shape, lambda i: (0, 0)))
        in_specs.append(pl.BlockSpec(b.shape, lambda i: (0, 0)))

    # Advisory cost estimate for XLA scheduling around the custom call.
    flops_per_row = sum(2 * w.shape[0] * w.shape[1] for w, _ in prepped_params)
    param_bytes = sum(w.size * w.dtype.itemsize + b.size * b.dtype.itemsize
                      for w, b in prepped_params)
    cost = pl.CostEstimate(
        flops=B * flops_per_row,
        transcendentals=B * out_dim,
        bytes_accessed=param_bytes + B * D * x.dtype.itemsize + B * out_dim * 4,
    )

    return pl.pallas_call(
        functools.partial(_discriminator_kernel, out_dim=out_dim),
        out_shape=jax.ShapeDtypeStruct((B, out_dim), jnp.float32),
        grid=grid,
        in_specs=in_specs,
        out_specs=pl.BlockSpec((TM, out_dim), lambda i: (i, 0)),
        compiler_params=pltpu.CompilerParams(
            dimension_semantics=("parallel",),
            vmem_limit_bytes=32 * 1024 * 1024),
        cost_estimate=cost,
    )(x, *flat)


# ----------------------------- reference / init ------------------------------


def init_params(key, dims):
    """Deterministic init mimicking PyTorch Linear: U(-1/sqrt(in), 1/sqrt(in))."""
    params = []
    for (d_in, d_out) in zip(dims[:-1], dims[1:]):
        key, kw, kb = jax.random.split(key, 3)
        bound = 1.0 / (d_in ** 0.5)
        w = jax.random.uniform(kw, (d_in, d_out), jnp.float32, -bound, bound)
        b = jax.random.uniform(kb, (1, d_out), jnp.float32, -bound, bound)
        params.append((w, b))
    return params


def reference_forward(x, params, bf16=False):
    """Pure-JAX reference. bf16=True mirrors the kernel's mixed precision."""
    cast = (lambda a: a.astype(jnp.bfloat16)) if bf16 else (lambda a: a)
    h = cast(x)
    for i, (w, b) in enumerate(params):
        h = jnp.dot(h, cast(w), preferred_element_type=jnp.float32) + b
        if i < len(params) - 1:
            h = cast(jnp.where(h > 0, h, NEG_SLOPE * h))
    return jax.nn.sigmoid(h)


if __name__ == "__main__":
    key = jax.random.PRNGKey(0)
    key, kdata = jax.random.split(key)

    INP, OUT = 784, 1
    dims = (INP, 300, 300, 300, 200, OUT)

    params = init_params(key, dims)
    prepped = prepare_params(params)

    # Tiny batch (single small tile), ragged 2-tile batch, and a larger batch
    # exercising the TM=512 / even-grid path.
    for B in (2, 300, 1024):
        kdata, kx = jax.random.split(kdata)
        x = jax.random.normal(kx, (B, INP), jnp.float32)

        out = jax.block_until_ready(discriminator_forward(x, prepped, OUT))
        assert out.shape == (B, OUT)

        ref_mixed = reference_forward(x, params, bf16=True)   # same precision recipe
        ref_f32 = reference_forward(x, params, bf16=False)    # full-precision sanity
        assert jnp.allclose(out, ref_mixed, atol=2e-3), (out, ref_mixed)
        assert jnp.allclose(out, ref_f32, atol=5e-2), (out, ref_f32)

    print("KERNEL_OK")
</pallas_src>

<mosaic_0001>
module attributes {stable_mosaic.version = 11 : i64} {
  func.func @_discriminator_kernel(%arg0: i32, %arg1: memref<8x784xf32, #tpu.memory_space<vmem>>, %arg2: memref<784x384xbf16, #tpu.memory_space<vmem>>, %arg3: memref<1x384xf32, #tpu.memory_space<vmem>>, %arg4: memref<384x384xbf16, #tpu.memory_space<vmem>>, %arg5: memref<1x384xf32, #tpu.memory_space<vmem>>, %arg6: memref<384x384xbf16, #tpu.memory_space<vmem>>, %arg7: memref<1x384xf32, #tpu.memory_space<vmem>>, %arg8: memref<384x256xbf16, #tpu.memory_space<vmem>>, %arg9: memref<1x256xf32, #tpu.memory_space<vmem>>, %arg10: memref<256x128xbf16, #tpu.memory_space<vmem>>, %arg11: memref<1x128xf32, #tpu.memory_space<vmem>>, %arg12: memref<8x1xf32, #tpu.memory_space<vmem>>) attributes {dimension_semantics = [#tpu.dimension_semantics<parallel>], iteration_bounds = array<i64: 1>, scalar_prefetch = 0 : i64, scratch_operands = 0 : i64, tpu.core_type = #tpu.core_type<tc>, window_params = [{transform_indices = @transform_0, window_bounds = array<i64: 8, 784>}, {pipeline_mode = #tpu.pipeline_mode<synchronous>, transform_indices = @transform_1, window_bounds = array<i64: 784, 384>}, {pipeline_mode = #tpu.pipeline_mode<synchronous>, transform_indices = @transform_2, window_bounds = array<i64: 1, 384>}, {pipeline_mode = #tpu.pipeline_mode<synchronous>, transform_indices = @transform_3, window_bounds = array<i64: 384, 384>}, {pipeline_mode = #tpu.pipeline_mode<synchronous>, transform_indices = @transform_4, window_bounds = array<i64: 1, 384>}, {pipeline_mode = #tpu.pipeline_mode<synchronous>, transform_indices = @transform_5, window_bounds = array<i64: 384, 384>}, {pipeline_mode = #tpu.pipeline_mode<synchronous>, transform_indices = @transform_6, window_bounds = array<i64: 1, 384>}, {pipeline_mode = #tpu.pipeline_mode<synchronous>, transform_indices = @transform_7, window_bounds = array<i64: 384, 256>}, {pipeline_mode = #tpu.pipeline_mode<synchronous>, transform_indices = @transform_8, window_bounds = array<i64: 1, 256>}, {pipeline_mode = #tpu.pipeline_mode<synchronous>, transform_indices = @transform_9, window_bounds = array<i64: 256, 128>}, {pipeline_mode = #tpu.pipeline_mode<synchronous>, transform_indices = @transform_10, window_bounds = array<i64: 1, 128>}, {transform_indices = @transform_11, window_bounds = array<i64: 8, 1>}]} {
    %c0 = arith.constant 0 : index
    %c0_0 = arith.constant 0 : index
    %0 = vector.load %arg1[%c0, %c0_0] : memref<8x784xf32, #tpu.memory_space<vmem>>, vector<8x784xf32>
    %1 = arith.truncf %0 : vector<8x784xf32> to vector<8x784xbf16>
    %c0_1 = arith.constant 0 : index
    %c0_2 = arith.constant 0 : index
    %2 = vector.load %arg2[%c0_1, %c0_2] : memref<784x384xbf16, #tpu.memory_space<vmem>>, vector<784x384xbf16>
    %cst = arith.constant dense<0.000000e+00> : vector<8x384xf32>
    %3 = tpu.matmul %1, %2, %cst {dimension_numbers = #tpu.dot_dimension_numbers<[1], [0], [0], [1], [0, 0, 1, 1], [], []>} : vector<8x784xbf16>, vector<784x384xbf16>, vector<8x384xf32> -> vector<8x384xf32>
    %c0_3 = arith.constant 0 : index
    %c0_4 = arith.constant 0 : index
    %4 = vector.load %arg3[%c0_3, %c0_4] : memref<1x384xf32, #tpu.memory_space<vmem>>, vector<1x384xf32>
    %5 = vector.broadcast %4 : vector<1x384xf32> to vector<8x384xf32>
    %6 = arith.addf %3, %5 : vector<8x384xf32>
    %cst_5 = arith.constant 0.000000e+00 : f32
    %7 = vector.broadcast %cst_5 : f32 to vector<8x384xf32>
    %8 = arith.cmpf ogt, %6, %7 : vector<8x384xf32>
    %cst_6 = arith.constant 0.00999999977 : f32
    %9 = vector.broadcast %cst_6 : f32 to vector<8x384xf32>
    %10 = arith.mulf %9, %6 : vector<8x384xf32>
    %11 = arith.select %8, %6, %10 : vector<8x384xi1>, vector<8x384xf32>
    %12 = arith.truncf %11 : vector<8x384xf32> to vector<8x384xbf16>
    %c0_7 = arith.constant 0 : index
    %c0_8 = arith.constant 0 : index
    %13 = vector.load %arg4[%c0_7, %c0_8] : memref<384x384xbf16, #tpu.memory_space<vmem>>, vector<384x384xbf16>
    %cst_9 = arith.constant dense<0.000000e+00> : vector<8x384xf32>
    %14 = tpu.matmul %12, %13, %cst_9 {dimension_numbers = #tpu.dot_dimension_numbers<[1], [0], [0], [1], [0, 0, 1, 1], [], []>} : vector<8x384xbf16>, vector<384x384xbf16>, vector<8x384xf32> -> vector<8x384xf32>
    %c0_10 = arith.constant 0 : index
    %c0_11 = arith.constant 0 : index
    %15 = vector.load %arg5[%c0_10, %c0_11] : memref<1x384xf32, #tpu.memory_space<vmem>>, vector<1x384xf32>
    %16 = vector.broadcast %15 : vector<1x384xf32> to vector<8x384xf32>
    %17 = arith.addf %14, %16 : vector<8x384xf32>
    %cst_12 = arith.constant 0.000000e+00 : f32
    %18 = vector.broadcast %cst_12 : f32 to vector<8x384xf32>
    %19 = arith.cmpf ogt, %17, %18 : vector<8x384xf32>
    %cst_13 = arith.constant 0.00999999977 : f32
    %20 = vector.broadcast %cst_13 : f32 to vector<8x384xf32>
    %21 = arith.mulf %20, %17 : vector<8x384xf32>
    %22 = arith.select %19, %17, %21 : vector<8x384xi1>, vector<8x384xf32>
    %23 = arith.truncf %22 : vector<8x384xf32> to vector<8x384xbf16>
    %c0_14 = arith.constant 0 : index
    %c0_15 = arith.constant 0 : index
    %24 = vector.load %arg6[%c0_14, %c0_15] : memref<384x384xbf16, #tpu.memory_space<vmem>>, vector<384x384xbf16>
    %cst_16 = arith.constant dense<0.000000e+00> : vector<8x384xf32>
    %25 = tpu.matmul %23, %24, %cst_16 {dimension_numbers = #tpu.dot_dimension_numbers<[1], [0], [0], [1], [0, 0, 1, 1], [], []>} : vector<8x384xbf16>, vector<384x384xbf16>, vector<8x384xf32> -> vector<8x384xf32>
    %c0_17 = arith.constant 0 : index
    %c0_18 = arith.constant 0 : index
    %26 = vector.load %arg7[%c0_17, %c0_18] : memref<1x384xf32, #tpu.memory_space<vmem>>, vector<1x384xf32>
    %27 = vector.broadcast %26 : vector<1x384xf32> to vector<8x384xf32>
    %28 = arith.addf %25, %27 : vector<8x384xf32>
    %cst_19 = arith.constant 0.000000e+00 : f32
    %29 = vector.broadcast %cst_19 : f32 to vector<8x384xf32>
    %30 = arith.cmpf ogt, %28, %29 : vector<8x384xf32>
    %cst_20 = arith.constant 0.00999999977 : f32
    %31 = vector.broadcast %cst_20 : f32 to vector<8x384xf32>
    %32 = arith.mulf %31, %28 : vector<8x384xf32>
    %33 = arith.select %30, %28, %32 : vector<8x384xi1>, vector<8x384xf32>
    %34 = arith.truncf %33 : vector<8x384xf32> to vector<8x384xbf16>
    %c0_21 = arith.constant 0 : index
    %c0_22 = arith.constant 0 : index
    %35 = vector.load %arg8[%c0_21, %c0_22] : memref<384x256xbf16, #tpu.memory_space<vmem>>, vector<384x256xbf16>
    %cst_23 = arith.constant dense<0.000000e+00> : vector<8x256xf32>
    %36 = tpu.matmul %34, %35, %cst_23 {dimension_numbers = #tpu.dot_dimension_numbers<[1], [0], [0], [1], [0, 0, 1, 1], [], []>} : vector<8x384xbf16>, vector<384x256xbf16>, vector<8x256xf32> -> vector<8x256xf32>
    %c0_24 = arith.constant 0 : index
    %c0_25 = arith.constant 0 : index
    %37 = vector.load %arg9[%c0_24, %c0_25] : memref<1x256xf32, #tpu.memory_space<vmem>>, vector<1x256xf32>
    %38 = vector.broadcast %37 : vector<1x256xf32> to vector<8x256xf32>
    %39 = arith.addf %36, %38 : vector<8x256xf32>
    %cst_26 = arith.constant 0.000000e+00 : f32
    %40 = vector.broadcast %cst_26 : f32 to vector<8x256xf32>
    %41 = arith.cmpf ogt, %39, %40 : vector<8x256xf32>
    %cst_27 = arith.constant 0.00999999977 : f32
    %42 = vector.broadcast %cst_27 : f32 to vector<8x256xf32>
    %43 = arith.mulf %42, %39 : vector<8x256xf32>
    %44 = arith.select %41, %39, %43 : vector<8x256xi1>, vector<8x256xf32>
    %45 = arith.truncf %44 : vector<8x256xf32> to vector<8x256xbf16>
    %c0_28 = arith.constant 0 : index
    %c0_29 = arith.constant 0 : index
    %46 = vector.load %arg10[%c0_28, %c0_29] : memref<256x128xbf16, #tpu.memory_space<vmem>>, vector<256x128xbf16>
    %cst_30 = arith.constant dense<0.000000e+00> : vector<8x128xf32>
    %47 = tpu.matmul %45, %46, %cst_30 {dimension_numbers = #tpu.dot_dimension_numbers<[1], [0], [0], [1], [0, 0, 1, 1], [], []>} : vector<8x256xbf16>, vector<256x128xbf16>, vector<8x128xf32> -> vector<8x128xf32>
    %c0_31 = arith.constant 0 : index
    %c0_32 = arith.constant 0 : index
    %48 = vector.load %arg11[%c0_31, %c0_32] : memref<1x128xf32, #tpu.memory_space<vmem>>, vector<1x128xf32>
    %49 = vector.broadcast %48 : vector<1x128xf32> to vector<8x128xf32>
    %50 = arith.addf %47, %49 : vector<8x128xf32>
    %51 = vector.extract_strided_slice %50 {offsets = [0, 0], sizes = [8, 1], strides = [1, 1]} : vector<8x128xf32> to vector<8x1xf32>
    %52 = arith.negf %51 : vector<8x1xf32>
    %53 = math.exp %52 : vector<8x1xf32>
    %cst_33 = arith.constant 1.000000e+00 : f32
    %54 = vector.broadcast %cst_33 : f32 to vector<8x1xf32>
    %55 = arith.addf %54, %53 : vector<8x1xf32>
    %56 = arith.divf %54, %55 : vector<8x1xf32>
    %c0_34 = arith.constant 0 : index
    %c0_35 = arith.constant 0 : index
    %57 = vector.load %arg12[%c0_34, %c0_35] : memref<8x1xf32, #tpu.memory_space<vmem>>, vector<8x1xf32>
    tpu.vector_store %arg12[%c0_34, %c0_35], %56 {strides = array<i32>} : memref<8x1xf32, #tpu.memory_space<vmem>>, vector<8x1xf32>,
    return
  }
  func.func @transform_0(%arg0: i32) -> (i32, i32) {
    %c0_i32 = arith.constant 0 : i32
    %c0_i32_0 = arith.constant 0 : i32
    return %arg0, %c0_i32 : i32, i32
  }
  func.func @transform_1(%arg0: i32) -> (i32, i32) {
    %c0_i32 = arith.constant 0 : i32
    %c0_i32_0 = arith.constant 0 : i32
    %c0_i32_1 = arith.constant 0 : i32
    return %c0_i32, %c0_i32_0 : i32, i32
  }
  func.func @transform_2(%arg0: i32) -> (i32, i32) {
    %c0_i32 = arith.constant 0 : i32
    %c0_i32_0 = arith.constant 0 : i32
    %c0_i32_1 = arith.constant 0 : i32
    return %c0_i32, %c0_i32_0 : i32, i32
  }
  func.func @transform_3(%arg0: i32) -> (i32, i32) {
    %c0_i32 = arith.constant 0 : i32
    %c0_i32_0 = arith.constant 0 : i32
    %c0_i32_1 = arith.constant 0 : i32
    return %c0_i32, %c0_i32_0 : i32, i32
  }
  func.func @transform_4(%arg0: i32) -> (i32, i32) {
    %c0_i32 = arith.constant 0 : i32
    %c0_i32_0 = arith.constant 0 : i32
    %c0_i32_1 = arith.constant 0 : i32
    return %c0_i32, %c0_i32_0 : i32, i32
  }
  func.func @transform_5(%arg0: i32) -> (i32, i32) {
    %c0_i32 = arith.constant 0 : i32
    %c0_i32_0 = arith.constant 0 : i32
    %c0_i32_1 = arith.constant 0 : i32
    return %c0_i32, %c0_i32_0 : i32, i32
  }
  func.func @transform_6(%arg0: i32) -> (i32, i32) {
    %c0_i32 = arith.constant 0 : i32
    %c0_i32_0 = arith.constant 0 : i32
    %c0_i32_1 = arith.constant 0 : i32
    return %c0_i32, %c0_i32_0 : i32, i32
  }
  func.func @transform_7(%arg0: i32) -> (i32, i32) {
    %c0_i32 = arith.constant 0 : i32
    %c0_i32_0 = arith.constant 0 : i32
    %c0_i32_1 = arith.constant 0 : i32
    return %c0_i32, %c0_i32_0 : i32, i32
  }
  func.func @transform_8(%arg0: i32) -> (i32, i32) {
    %c0_i32 = arith.constant 0 : i32
    %c0_i32_0 = arith.constant 0 : i32
    %c0_i32_1 = arith.constant 0 : i32
    return %c0_i32, %c0_i32_0 : i32, i32
  }
  func.func @transform_9(%arg0: i32) -> (i32, i32) {
    %c0_i32 = arith.constant 0 : i32
    %c0_i32_0 = arith.constant 0 : i32
    %c0_i32_1 = arith.constant 0 : i32
    return %c0_i32, %c0_i32_0 : i32, i32
  }
  func.func @transform_10(%arg0: i32) -> (i32, i32) {
    %c0_i32 = arith.constant 0 : i32
    %c0_i32_0 = arith.constant 0 : i32
    %c0_i32_1 = arith.constant 0 : i32
    return %c0_i32, %c0_i32_0 : i32, i32
  }
  func.func @transform_11(%arg0: i32) -> (i32, i32) {
    %c0_i32 = arith.constant 0 : i32
    %c0_i32_0 = arith.constant 0 : i32
    return %arg0, %c0_i32 : i32, i32
  }
}

</mosaic_0001>

<bundles_post_ra>
// kernel: discriminator_forward.1
= control target key start
LH: loop header
LB: loop body
LE: loop exit
PB: predicated region body
PF: predicated region fallthrough
CT: control target
= control target key end

     0   :  { %16 = vsyncpa [#allocation3], 0  ;;  %s5025_s0 = inlined_call_operand.hbm [shape: f32[2,784], index: 0, kind: input, shape index: {}]   ;;  %s5026_s1 = inlined_call_operand.hbm [shape: bf16[784,384], index: 1, kind: input, shape index: {}]   ;;  %s5027_s2 = inlined_call_operand.vmem [shape: f32[1,384], index: 2, kind: input, shape index: {}]   ;;  %s5028_s3 = inlined_call_operand.hbm [shape: bf16[384,384], index: 3, kind: input, shape index: {}]   ;;  %s5029_s4 = inlined_call_operand.vmem [shape: f32[1,384], index: 4, kind: input, shape index: {}]   ;;  %s5030_s5 = inlined_call_operand.hbm [shape: bf16[384,384], index: 5, kind: input, shape index: {}]   ;;  %s5031_s6 = inlined_call_operand.vmem [shape: f32[1,384], index: 6, kind: input, shape index: {}]   ;;  %s5032_s7 = inlined_call_operand.hbm [shape: bf16[384,256], index: 7, kind: input, shape index: {}]   ;;  %s5033_s8 = inlined_call_operand.vmem [shape: f32[1,256], index: 8, kind: input, shape index: {}]   ;;  %s5034_s9 = inlined_call_operand.hbm [shape: bf16[256,128], index: 9, kind: input, shape index: {}]   ;;  %s5035_s10 = inlined_call_operand.vmem [shape: f32[1,128], index: 10, kind: input, shape index: {}]   ;;  %s5036_s11 = inlined_call_operand.vmem [shape: f32[2,1], index: 11, kind: output, shape index: {}]  }
   0x1   :  { %17 = vsyncpa [#allocation5], 0 }
   0x2   :  { %18 = vsyncpa [#allocation8], 0 }
   0x3   :  { %19 = vsyncpa [#allocation11], 0 }
   0x4   :  { %24 = vsyncadd [#allocation3], 672  ;;  %s4756_s17 = smov [#allocation4]   ;;  %s4616_s21 = scalar_lea.hbm %s5026_s1, 18816 }
   0x5   :  { %s37_s18 = sshll.u32 %s4756_s17, 4  ;;  %p4617_p0 = scmp.ne.s32.totalorder %s5026_s1, %s4616_s21  ;;  %s38_s18 = int_to_ptr.vmem [resolvable:$true] %s37_s18 }
   0x6   :  { %p4620_p1 = scmp.lt.u32.totalorder %s4616_s21, %s5026_s1 }
   0x8   :  { %p4622_p2 = pnand %p4620_p1, %p4617_p0 }
   0xa   :  { %4625 = shalt.err (!%p4622_p2)
}
   0xb   :  { %s4626_s26 = scalar_lea.vmem %s38_s18, 18816  ;;  %p4631_p4 = scmp.lt.s32.totalorder %s38_s18, %s38_s18 }
   0xc   :  { %p4627_p3 = scmp.ne.s32.totalorder %s38_s18, %s4626_s26  ;;  %p4632_p5 = scmp.lt.s32.totalorder %s4626_s26, %s4626_s26 }
   0xe   :  { %p4633_p6 = por %p4632_p5, %p4631_p4 }
  0x10   :  { %p4634_p7 = pnand %p4633_p6, %p4627_p3 }
  0x12   :  { %4637 = shalt.err (!%p4634_p7)
}
  0x13   :  { %s4757_s27 = smov 192   ;;  %s4758_s28 = smov 12  }
  0x14   :  { %43 = dma.hbm_to_vmem [thread:$0]  %s5026_s1, 18816, %s38_s18, [#allocation5], %s4757_s27, %s4757_s27, %s4758_s28  }
  0x15   :  { %s4759_s12 = smov [#allocation7]   ;;  %s4760_s14 = smov [#allocation2]  }
  0x16   :  { %s65_s13 = sshll.u32 %s4759_s12, 4  ;;  %s25_s15 = sshll.u32 %s4760_s14, 4  ;;  %s66_s13 = int_to_ptr.vmem [resolvable:$true] %s65_s13  ;;  %s26_s15 = int_to_ptr.vmem [resolvable:$true] %s25_s15 }
  0x17   :  { %s4638_s19 = scalar_lea.hbm %s5030_s5, 9216 }
  0x18   :  { %p4639_p8 = scmp.ne.s32.totalorder %s5030_s5, %s4638_s19  ;;  %p4642_p9 = scmp.lt.u32.totalorder %s4638_s19, %s5030_s5 }
  0x1a   :  { %p4644_p10 = pnand %p4642_p9, %p4639_p8 }
  0x1c   :  { %4647 = shalt.err (!%p4644_p10)
}
  0x1d   :  { %s4648_s1 = scalar_lea.vmem %s66_s13, 9216  ;;  %p4653_p12 = scmp.lt.s32.totalorder %s66_s13, %s66_s13 }
  0x1e   :  { %p4649_p11 = scmp.ne.s32.totalorder %s66_s13, %s4648_s1  ;;  %p4654_p13 = scmp.lt.s32.totalorder %s4648_s1, %s4648_s1 }
  0x20   :  { %p4655_p0 = por %p4654_p13, %p4653_p12 }
  0x22   :  { %p4656_p1 = pnand %p4655_p0, %p4649_p11 }
  0x24   :  { %4659 = shalt.err (!%p4656_p1)
}
  0x25   :  { %71 = dma.hbm_to_vmem [thread:$0]  %s5030_s5, 9216, %s66_s13, [#allocation8], %s4757_s27, %s4757_s27, %s4758_s28  }
  0x26   :  { %s4660_s29 = scalar_lea.hbm %s5025_s0, 224 }
  0x27   :  { %p4661_p2 = scmp.ne.s32.totalorder %s5025_s0, %s4660_s29  ;;  %p4664_p3 = scmp.lt.u32.totalorder %s4660_s29, %s5025_s0 }
  0x29   :  { %p4666_p4 = pnand %p4664_p3, %p4661_p2 }
  0x2b   :  { %4669 = shalt.err (!%p4666_p4)
}
  0x2c   :  { %s4670_s17 = scalar_lea.vmem %s26_s15, 224  ;;  %s4674_s19 = scalar_lea.vmem %s26_s15, 896 }
  0x2d   :  { %p4671_p5 = scmp.ne.s32.totalorder %s26_s15, %s4670_s17  ;;  %p4675_p6 = scmp.lt.s32.totalorder %s26_s15, %s26_s15 }
  0x2e   :  { %p4676_p7 = scmp.lt.s32.totalorder %s4674_s19, %s4670_s17 }
  0x30   :  { %p4677_p8 = por %p4676_p7, %p4675_p6 }
  0x32   :  { %p4678_p9 = pnand %p4677_p8, %p4671_p5 }
  0x34   :  { %4681 = shalt.err (!%p4678_p9)
}
  0x35   :  { %s4761_s5 = smov 224   ;;  %s4762_s13 = smov 14  }
  0x36   :  { %31 = dma.hbm_to_vmem [thread:$0]  %s5025_s0, 224, %s26_s15, [#allocation3], %s4761_s5, %s4761_s5, %s4762_s13  }
  0x37   :  { %s4763_s22 = smov [#allocation6]   ;;  %s4764_s1 = smov [#allocation9]  }
  0x38   :  { %s51_s23 = sshll.u32 %s4763_s22, 4  ;;  %s79_s18 = sshll.u32 %s4764_s1, 4  ;;  %s52_s23 = int_to_ptr.vmem [resolvable:$true] %s51_s23  ;;  %s80_s18 = int_to_ptr.vmem [resolvable:$true] %s79_s18 }
  0x39   :  { %s4682_s26 = scalar_lea.hbm %s5028_s3, 9216 }
  0x3a   :  { %p4683_p10 = scmp.ne.s32.totalorder %s5028_s3, %s4682_s26  ;;  %p4686_p11 = scmp.lt.u32.totalorder %s4682_s26, %s5028_s3 }
  0x3c   :  { %p4688_p12 = pnand %p4686_p11, %p4683_p10 }
  0x3e   :  { %4691 = shalt.err (!%p4688_p12)
}
  0x3f   :  { %s4692_s0 = scalar_lea.vmem %s52_s23, 9216  ;;  %p4697_p0 = scmp.lt.s32.totalorder %s52_s23, %s52_s23 }
  0x40   :  { %p4693_p13 = scmp.ne.s32.totalorder %s52_s23, %s4692_s0  ;;  %p4698_p1 = scmp.lt.s32.totalorder %s4692_s0, %s4692_s0 }
  0x42   :  { %p4699_p2 = por %p4698_p1, %p4697_p0 }
  0x44   :  { %p4700_p3 = pnand %p4699_p2, %p4693_p13 }
  0x46   :  { %4703 = shalt.err (!%p4700_p3)
}
  0x47   :  { %57 = dma.hbm_to_vmem [thread:$0]  %s5028_s3, 9216, %s52_s23, [#allocation5], %s4757_s27, %s4757_s27, %s4758_s28  }
  0x48   :  { %s4704_s5 = scalar_lea.hbm %s5032_s7, 6144 }
  0x49   :  { %p4705_p4 = scmp.ne.s32.totalorder %s5032_s7, %s4704_s5  ;;  %p4708_p5 = scmp.lt.u32.totalorder %s4704_s5, %s5032_s7 }
  0x4b   :  { %p4710_p6 = pnand %p4708_p5, %p4705_p4 }
  0x4d   :  { %4713 = shalt.err (!%p4710_p6)
}
  0x4e   :  { %s4714_s1 = scalar_lea.vmem %s80_s18, 6144  ;;  %p4719_p8 = scmp.lt.s32.totalorder %s80_s18, %s80_s18 }
  0x4f   :  { %p4715_p7 = scmp.ne.s32.totalorder %s80_s18, %s4714_s1  ;;  %p4720_p9 = scmp.lt.s32.totalorder %s4714_s1, %s4714_s1 }
  0x51   :  { %p4721_p10 = por %p4720_p9, %p4719_p8 }
  0x53   :  { %p4722_p11 = pnand %p4721_p10, %p4715_p7 }
  0x55   :  { %4725 = shalt.err (!%p4722_p11)
}
  0x56   :  { %s4765_s3 = smov 128   ;;  %s4766_s27 = smov 8  }
  0x57   :  { %85 = dma.hbm_to_vmem [thread:$0]  %s5032_s7, 6144, %s80_s18, [#allocation8], %s4765_s3, %s4765_s3, %s4766_s27  }
  0x58   :  { %s4767_s24 = smov [#allocation10]   ;;  %s4726_s30 = scalar_lea.hbm %s5034_s9, 2048 }
  0x59   :  { %s93_s25 = sshll.u32 %s4767_s24, 4  ;;  %p4727_p12 = scmp.ne.s32.totalorder %s5034_s9, %s4726_s30  ;;  %s94_s25 = int_to_ptr.vmem [resolvable:$true] %s93_s25 }
  0x5a   :  { %p4730_p13 = scmp.lt.u32.totalorder %s4726_s30, %s5034_s9 }
  0x5c   :  { %p4732_p0 = pnand %p4730_p13, %p4727_p12 }
  0x5e   :  { %4735 = shalt.err (!%p4732_p0)
}
  0x5f   :  { %s4736_s16 = scalar_lea.vmem %s94_s25, 2048  ;;  %p4741_p2 = scmp.lt.s32.totalorder %s94_s25, %s94_s25 }
  0x60   :  { %p4737_p1 = scmp.ne.s32.totalorder %s94_s25, %s4736_s16  ;;  %p4742_p3 = scmp.lt.s32.totalorder %s4736_s16, %s4736_s16 }
  0x62   :  { %p4743_p4 = por %p4742_p3, %p4741_p2 }
  0x64   :  { %p4744_p5 = pnand %p4743_p4, %p4737_p1 }
  0x66   :  { %4747 = shalt.err (!%p4744_p5)
}
  0x67   :  { %s4768_s7 = smov 64   ;;  %s4769_s18 = smov 4  }
  0x68   :  { %99 = dma.hbm_to_vmem [thread:$0]  %s5034_s9, 2048, %s94_s25, [#allocation11], %s4768_s7, %s4768_s7, %s4769_s18  }
  0x69   :  { %4748 = dma.done.wait [#allocation3], 896  }
  0x6a   :  { %4749 = vsyncadd [#allocation3], 4294966400 }
  0x6b   :  { %4750 = dma.done.wait [#allocation5], 28032  }
  0x6c   :  { %4751 = vsyncadd [#allocation5], 4294939264 }
  0x6d   :  { %4752 = dma.done.wait [#allocation8], 15360  }
  0x6e   :  { %4753 = vsyncadd [#allocation8], 4294951936 }
  0x6f   :  { %4754 = dma.done.wait [#allocation11], 2048  }
  0x70   :  { %4755 = vsyncadd [#allocation11], 4294965248  ;;  %v4124_v0 = vld [vmem:[#allocation4 + $0x4] ss:$12 sps:$4 sm:$0xff]   ;;  %v4126_v1 = vld [vmem:[#allocation4] ss:$12 sps:$4 sm:$0xff]   ;;  %v144_v11 = vlaneseq }
  0x71   :  { %1223 = vmatprep.subr.bf16.mxu0 %v4124_v0  ;;  %v4127_v2 = vld [vmem:[#allocation4 + $0x1c] ss:$12 sps:$4 sm:$0xff]   ;;  %v4129_v3 = vld [vmem:[#allocation4 + $0x18] ss:$12 sps:$4 sm:$0xff]   ;;  %v4130_v4 = vld [vmem:[#allocation4 + $0x34] ss:$12 sps:$4 sm:$0xff]  }
  0x72   :  { %1224 = vmatpush1.bf16.msra.mxu0 %v4126_v1  ;;  %v4132_v5 = vld [vmem:[#allocation4 + $0x30] ss:$12 sps:$4 sm:$0xff]   ;;  %v4133_v6 = vld [vmem:[#allocation4 + $0x4c] ss:$12 sps:$4 sm:$0xff]   ;;  %v4135_v7 = vld [vmem:[#allocation4 + $0x48] ss:$12 sps:$4 sm:$0xff]  }
  0x73   :  { %1225 = vmatprep.subr.bf16.mxu0 %v4127_v2  ;;  %v4136_v8 = vld [vmem:[#allocation4 + $0x64] ss:$12 sps:$4 sm:$0xff]   ;;  %v4770_v9 = vmov 1983009808   ;;  %v4138_v12 = vld [vmem:[#allocation4 + $0x60] ss:$12 sps:$4 sm:$0xff]  }
  0x74   :  { %v142_v10 = vunpack.c.l.s4 %v4770_v9  ;;  %v4139_v13 = vld [vmem:[#allocation4 + $0x7c] ss:$12 sps:$4 sm:$0xff]   ;;  %v4915_v15 = vshrl.u32 %v144_v11, 7  ;;  %v4141_v16 = vld [vmem:[#allocation4 + $0x78] ss:$12 sps:$4 sm:$0xff]   ;;  %vm1219_vm0 = vcmask 130048  }
  0x75   :  { %v4142_v17 = vld [vmem:[#allocation4 + $0x94] ss:$12 sps:$4 sm:$0xff]   ;;  %v4144_v20 = vld [vmem:[#allocation4 + $0x90] ss:$12 sps:$4 sm:$0xff]   ;;  %v4145_v22 = vld [vmem:[#allocation4 + $0xac] ss:$12 sps:$4 sm:$0xff]  }
  0x76   :  { %1226 = vmatpush1.bf16.msra.mxu0 %v4129_v3  ;;  %v143_v14 = vunpack.c.0.s8 %v142_v10  ;;  %v4172_v19 = vld [vmem:[#allocation2] ss:$14 sps:$4 sm:$0xff]   ;;  %v4175_v21 = vld [vmem:[#allocation2 + $0x1c] ss:$14 sps:$4 sm:$0xff]   ;;  %v4150_v28 = vld [vmem:[#allocation4 + $0xc0] ss:$12 sps:$4 sm:$0xff]  }
  0x77   :  { %1227 = vmatprep.subr.bf16.mxu0 %v4130_v4  ;;  %v4147_v25 = vld [vmem:[#allocation4 + $0xa8] ss:$12 sps:$4 sm:$0xff]   ;;  %v4148_v27 = vld [vmem:[#allocation4 + $0xc4] ss:$12 sps:$4 sm:$0xff]   ;;  %v4195_v33 = vld [vmem:[#allocation4 + $0xe0] ss:$12 sps:$4 sm:$0xff]  }
  0x78   :  { %v4918_v18 = vsub.s32 %v143_v14, %v4915_v15  ;;  %v4190_v30 = vld [vmem:[#allocation4 + $0xc8] ss:$12 sps:$4 sm:$0xff]   ;;  %v4196_v34 = vld [vmem:[#allocation4 + $0x20] ss:$12 sps:$4 sm:$0xff]   ;;  %v4153_v35 = vld [vmem:[#allocation4 + $0xd8] ss:$12 sps:$4 sm:$0xff]  }
  0x79   :  { %v4191_v31 = vld [vmem:[#allocation4 + $0x8] ss:$12 sps:$4 sm:$0xff]   ;;  %3876 = vmatprep.subr.bf16.mxu1 %v4190_v30  ;;  %v4200_v37 = vld [vmem:[#allocation4 + $0xf8] ss:$12 sps:$4 sm:$0xff]   ;;  %v4156_v39 = vld [vmem:[#allocation4 + $0xf0] ss:$12 sps:$4 sm:$0xff]  }
  0x7a   :  { %1228 = vmatpush1.bf16.msra.mxu0 %v4132_v5  ;;  %v4921_v23 = vrot.slane %v4172_v19, %v4918_v18  ;;  %v4924_v24 = vrot.slane %v4175_v21, %v4918_v18  ;;  %v4151_v32 = vld [vmem:[#allocation4 + $0xdc] ss:$12 sps:$4 sm:$0xff]   ;;  %3877 = vmatpush3.bf16.msra.mxu1 %v4191_v31  ;;  %v4154_v36 = vld [vmem:[#allocation4 + $0xf4] ss:$12 sps:$4 sm:$0xff]   ;;  %v4201_v38 = vld [vmem:[#allocation4 + $0x38] ss:$12 sps:$4 sm:$0xff]  }
  0x7b   :  { %1229 = vmatprep.subr.bf16.mxu0 %v4133_v6  ;;  %3878 = vmatprep.subr.bf16.mxu1 %v4195_v33  ;;  %v4157_v40 = vld [vmem:[#allocation4 + $0x10c] ss:$12 sps:$4 sm:$0xff]   ;;  %v4205_v41 = vld [vmem:[#allocation4 + $0x110] ss:$12 sps:$4 sm:$0xff]   ;;  %v4159_v43 = vld [vmem:[#allocation4 + $0x108] ss:$12 sps:$4 sm:$0xff]  }
  0x7c   :  { %v170_v26 = vcombine.high %v4921_v23, %v4924_v24  ;;  %v4206_v42 = vld [vmem:[#allocation4 + $0x50] ss:$12 sps:$4 sm:$0xff]   ;;  %v4210_v44 = vld [vmem:[#allocation4 + $0x128] ss:$12 sps:$4 sm:$0xff]   ;;  %v4215_v47 = vld [vmem:[#allocation4 + $0x140] ss:$12 sps:$4 sm:$0xff]   ;;  %v169_v63 = vcombine.low %v4921_v23, %v4924_v24 }
  0x7d   :  { %v4160_v45 = vld [vmem:[#allocation4 + $0x124] ss:$12 sps:$4 sm:$0xff]   ;;  %v4211_v46 = vld [vmem:[#allocation4 + $0x68] ss:$12 sps:$4 sm:$0xff]   ;;  %v4162_v48 = vld [vmem:[#allocation4 + $0x120] ss:$12 sps:$4 sm:$0xff]  }
  0x7e   :  { %1230 = vmatpush1.bf16.msra.mxu0 %v4135_v7  ;;  %v216_v29 = vpack.c.bf16 %v170_v26, %v170_v26  ;;  %3879 = vmatpush3.bf16.msra.mxu1 %v4196_v34  ;;  %v4163_v49 = vld [vmem:[#allocation4 + $0x13c] ss:$12 sps:$4 sm:$0xff]   ;;  %v4165_v50 = vld [vmem:[#allocation4 + $0x138] ss:$12 sps:$4 sm:$0xff]   ;;  %v4216_v52 = vld [vmem:[#allocation4 + $0x80] ss:$12 sps:$4 sm:$0xff]   ;;  %v215_v5 = vpack.c.bf16 %v169_v63, %v169_v63 }
  0x7f   :  { %1231 = vmatprep.subr.bf16.mxu0 %v4136_v8  ;;  %3880 = vmatprep.subr.bf16.mxu1 %v4200_v37  ;;  %v4174_v51 = vld [vmem:[#allocation2 + $0x4] ss:$14 sps:$4 sm:$0xff]   ;;  %v4177_v54 = vld [vmem:[#allocation2 + $0x20] ss:$14 sps:$4 sm:$0xff]   ;;  %v4180_v3 = vld [vmem:[#allocation4 + $0x184] ss:$12 sps:$4 sm:$0xff]  }
  0x80   :  { %1255 = vmatprep.mubr.bf16.mxu0 %v216_v29  ;;  %1419 = vmatprep.mubr.bf16.mxu1 %v216_v29  ;;  %v4220_v53 = vld [vmem:[#allocation4 + $0x158] ss:$12 sps:$4 sm:$0xff]   ;;  %v4166_v55 = vld [vmem:[#allocation4 + $0x154] ss:$12 sps:$4 sm:$0xff]   ;;  %v4225_v57 = vld [vmem:[#allocation4 + $0x170] ss:$12 sps:$4 sm:$0xff]   ;;  %v4929_v59 = vrot.slane %v4174_v51, %v4918_v18  ;;  %v4932_v60 = vrot.slane %v4177_v54, %v4918_v18 }
  0x81   :  { %v4221_v56 = vld [vmem:[#allocation4 + $0x98] ss:$12 sps:$4 sm:$0xff]   ;;  %v4168_v58 = vld [vmem:[#allocation4 + $0x150] ss:$12 sps:$4 sm:$0xff]   ;;  %v4230_v0 = vld [vmem:[#allocation4 + $0x248] ss:$12 sps:$4 sm:$0xff]  }
  0x82   :  { %1232 = vmatpush1.bf16.msra.mxu0 %v4138_v12  ;;  %3881 = vmatpush3.bf16.msra.mxu1 %v4201_v38  ;;  %v4169_v61 = vld [vmem:[#allocation4 + $0x16c] ss:$12 sps:$4 sm:$0xff]   ;;  %v4226_v62 = vld [vmem:[#allocation4 + $0xb0] ss:$12 sps:$4 sm:$0xff]   ;;  %v4171_v1 = vld [vmem:[#allocation4 + $0x168] ss:$12 sps:$4 sm:$0xff]   ;;  %v172_v2 = vcombine.high %v4929_v59, %v4932_v60  ;;  %v171_v37 = vcombine.low %v4929_v59, %v4932_v60 }
  0x83   :  { %1233 = vmatprep.subr.bf16.mxu0 %v4139_v13  ;;  %3882 = vmatprep.subr.bf16.mxu1 %v4205_v41  ;;  %v4231_v4 = vld [vmem:[#allocation4 + $0x188] ss:$12 sps:$4 sm:$0xff]   ;;  %v4235_v6 = vld [vmem:[#allocation4 + $0x260] ss:$12 sps:$4 sm:$0xff]   ;;  %v4240_v11 = vld [vmem:[#allocation4 + $0x278] ss:$12 sps:$4 sm:$0xff]  }
  0x84   :  { %v4178_v7 = vld [vmem:[#allocation4 + $0x180] ss:$12 sps:$4 sm:$0xff]   ;;  %v218_v8 = vpack.c.bf16 %v172_v2, %v172_v2  ;;  %v4183_v9 = vld [vmem:[#allocation4 + $0x19c] ss:$12 sps:$4 sm:$0xff]   ;;  %v4181_v12 = vld [vmem:[#allocation4 + $0x198] ss:$12 sps:$4 sm:$0xff]  }
  0x85   :  { %v4236_v10 = vld [vmem:[#allocation4 + $0x1a0] ss:$12 sps:$4 sm:$0xff]   ;;  %v4241_v14 = vld [vmem:[#allocation4 + $0x1b8] ss:$12 sps:$4 sm:$0xff]   ;;  %v4250_v21 = vld [vmem:[#allocation4 + $0x2a8] ss:$12 sps:$4 sm:$0xff]  }
  0x86   :  { %1234 = vmatpush1.bf16.msra.mxu0 %v4141_v16  ;;  %3883 = vmatpush3.bf16.msra.mxu1 %v4206_v42  ;;  %v4186_v13 = vld [vmem:[#allocation4 + $0x1b4] ss:$12 sps:$4 sm:$0xff]   ;;  %v4245_v16 = vld [vmem:[#allocation4 + $0x290] ss:$12 sps:$4 sm:$0xff]   ;;  %v4189_v19 = vld [vmem:[#allocation4 + $0x1cc] ss:$12 sps:$4 sm:$0xff]   ;;  %v4940_v42 = vpack.c.bf16 %v171_v37, %v171_v37 }
  0x87   :  { %1235 = vmatprep.subr.bf16.mxu0 %v4142_v17  ;;  %3884 = vmatprep.subr.bf16.mxu1 %v4210_v44  ;;  %v4184_v17 = vld [vmem:[#allocation4 + $0x1b0] ss:$12 sps:$4 sm:$0xff]   ;;  %v4251_v24 = vld [vmem:[#allocation4 + $0x1e8] ss:$12 sps:$4 sm:$0xff]   ;;  %v4192_v26 = vld [vmem:[#allocation4 + $0x1e0] ss:$12 sps:$4 sm:$0xff]  }
  0x88   :  { %v4194_v23 = vld [vmem:[#allocation4 + $0x1e4] ss:$12 sps:$4 sm:$0xff]   ;;  %v4204_v31 = vld [vmem:[#allocation4 + $0x214] ss:$12 sps:$4 sm:$0xff]   ;;  %v4239_v63 = vld [vmem:[#allocation4 + $0x2bc] ss:$12 sps:$4 sm:$0xff]  }
  0x89   :  { %v4260_v29 = vld [vmem:[#allocation4 + $0x2d8] ss:$12 sps:$4 sm:$0xff]   ;;  %v4265_v33 = vld [vmem:[#allocation4 + $0x2f0] ss:$12 sps:$4 sm:$0xff]   ;;  %v4270_v38 = vld [vmem:[#allocation4 + $0x3c8] ss:$12 sps:$4 sm:$0xff]  }
  0x8a   :  { %1236 = vmatpush1.bf16.msra.mxu0 %v4144_v20  ;;  %3885 = vmatpush3.bf16.msra.mxu1 %v4211_v46  ;;  %v4246_v20 = vld [vmem:[#allocation4 + $0x1d0] ss:$12 sps:$4 sm:$0xff]   ;;  %v4197_v30 = vld [vmem:[#allocation4 + $0x1f8] ss:$12 sps:$4 sm:$0xff]   ;;  %v4271_v41 = vld [vmem:[#allocation4 + $0x308] ss:$12 sps:$4 sm:$0xff]  }
  0x8b   :  { %1237 = vmatprep.subr.bf16.mxu0 %v4145_v22  ;;  %3886 = vmatprep.subr.bf16.mxu1 %v4215_v47  ;;  %v4187_v22 = vld [vmem:[#allocation4 + $0x1c8] ss:$12 sps:$4 sm:$0xff]   ;;  %v4202_v34 = vld [vmem:[#allocation4 + $0x210] ss:$12 sps:$4 sm:$0xff]   ;;  %v4212_v44 = vld [vmem:[#allocation4 + $0x240] ss:$12 sps:$4 sm:$0xff]  }
  0x8c   :  { %v4276_v46 = vld [vmem:[#allocation4 + $0x320] ss:$12 sps:$4 sm:$0xff]   ;;  %v4280_v47 = vld [vmem:[#allocation4 + $0x3f8] ss:$12 sps:$4 sm:$0xff]   ;;  %v4285_v51 = vld [vmem:[#allocation4 + $0x410] ss:$12 sps:$4 sm:$0xff]  }
  0x8d   :  { %v4227_v54 = vld [vmem:[#allocation4 + $0x288] ss:$12 sps:$4 sm:$0xff]   ;;  %v4295_v59 = vld [vmem:[#allocation4 + $0x440] ss:$12 sps:$4 sm:$0xff]   ;;  %v4277_v37 = vld [vmem:[#allocation4 + $0x378] ss:$12 sps:$4 sm:$0xff]  }
  0x8e   :  { %1238 = vmatpush1.bf16.msra.mxu0 %v4147_v25  ;;  %3887 = vmatpush3.bf16.msra.mxu1 %v4216_v52  ;;  %v4255_v25 = vld [vmem:[#allocation4 + $0x2c0] ss:$12 sps:$4 sm:$0xff]   ;;  %v4222_v52 = vld [vmem:[#allocation4 + $0x270] ss:$12 sps:$4 sm:$0xff]   ;;  %vm4773_vm1 = vmmov 0   ;;  %vm3472_vm13 = vcmask 7168  }
  0x8f   :  { %1239 = vmatprep.subr.bf16.mxu0 %v4148_v27  ;;  %3888 = vmatprep.subr.bf16.mxu1 %v4220_v53  ;;  %v4199_v27 = vld [vmem:[#allocation4 + $0x1fc] ss:$12 sps:$4 sm:$0xff]   ;;  %v4229_v53 = vld [vmem:[#allocation4 + $0x28c] ss:$12 sps:$4 sm:$0xff]  }
  0x90   :  { %v4310_v60 = vld [vmem:[#allocation2 + $0x8] ss:$14 sps:$4 sm:$0xff]  }
  0x92   :  { %1240 = vmatpush1.bf16.msra.mxu0 %v4150_v28  ;;  %3889 = vmatpush3.bf16.msra.mxu1 %v4221_v56  ;;  %v4256_v28 = vld [vmem:[#allocation4 + $0x200] ss:$12 sps:$4 sm:$0xff]   ;;  %v4290_v56 = vld [vmem:[#allocation4 + $0x428] ss:$12 sps:$4 sm:$0xff]  }
  0x93   :  { %1241 = vmatprep.subr.bf16.mxu0 %v4151_v32  ;;  %3890 = vmatprep.subr.bf16.mxu1 %v4225_v57  ;;  %v4261_v32 = vld [vmem:[#allocation4 + $0x218] ss:$12 sps:$4 sm:$0xff]  }
  0x94   :  { %v4234_v57 = vld [vmem:[#allocation4 + $0x2a4] ss:$12 sps:$4 sm:$0xff]  }
  0x96   :  { %1242 = vmatpush1.bf16.msra.mxu0 %v4153_v35  ;;  %3891 = vmatpush3.bf16.msra.mxu1 %v4226_v62  ;;  %v4209_v35 = vld [vmem:[#allocation4 + $0x22c] ss:$12 sps:$4 sm:$0xff]  }
  0x97   :  { %1243 = vmatprep.subr.bf16.mxu0 %v4154_v36  ;;  %3898 = vmatprep.subr.bf16.mxu1 %v4230_v0  ;;  %v4266_v36 = vld [vmem:[#allocation4 + $0x230] ss:$12 sps:$4 sm:$0xff]   ;;  %v183_v0 = vrot.slane %v4310_v60, %v4918_v18  ;;  %v4327_v60 = vld [vmem:[#allocation4 + $0x46c] ss:$12 sps:$4 sm:$0xff]  }
  0x98   :  { %v4313_v62 = vld [vmem:[#allocation2 + $0x24] ss:$14 sps:$4 sm:$0xff]  }
  0x99   :  { %1420 = vmatmul.mubr.bf16.vlgmr.msra.gmra.mrb[0].mxu1 %v215_v5  ;;  %v197_v2 = vrot.slane %v4313_v62, %v4918_v18  ;;  %v4330_v62 = vld [vmem:[#allocation4 + $0x484] ss:$12 sps:$4 sm:$0xff]  }
  0x9a   :  { %1244 = vmatpush1.bf16.msra.mxu0 %v4156_v39  ;;  %3899 = vmatpush3.bf16.msra.mxu1 %v4231_v4  ;;  %v4207_v39 = vld [vmem:[#allocation4 + $0x228] ss:$12 sps:$4 sm:$0xff]   ;;  %v4237_v4 = vld [vmem:[#allocation4 + $0x2b8] ss:$12 sps:$4 sm:$0xff]  }
  0x9b   :  { %1245 = vmatprep.subr.bf16.mxu0 %v4157_v40  ;;  %1459 = vmatprep.mubr.bf16.mxu1 %v218_v8  ;;  %v4214_v40 = vld [vmem:[#allocation4 + $0x244] ss:$12 sps:$4 sm:$0xff]  }
  0x9c   :  { %3900 = vmatprep.subr.bf16.mxu1 %v4235_v6  ;;  %v4244_v6 = vld [vmem:[#allocation4 + $0x2d4] ss:$12 sps:$4 sm:$0xff]  }
  0x9e   :  { %1246 = vmatpush1.bf16.msra.mxu0 %v4159_v43  ;;  %3901 = vmatpush3.bf16.msra.mxu1 %v4236_v10  ;;  %v4275_v43 = vld [vmem:[#allocation4 + $0x3e0] ss:$12 sps:$4 sm:$0xff]   ;;  %v4242_v10 = vld [vmem:[#allocation4 + $0x2d0] ss:$12 sps:$4 sm:$0xff]  }
  0x9f   :  { %1247 = vmatprep.subr.bf16.mxu0 %v4160_v45  ;;  %3902 = vmatprep.subr.bf16.mxu1 %v4240_v11  ;;  %v4219_v45 = vld [vmem:[#allocation4 + $0x25c] ss:$12 sps:$4 sm:$0xff]   ;;  %v4249_v11 = vld [vmem:[#allocation4 + $0x2ec] ss:$12 sps:$4 sm:$0xff]  }
  0xa2   :  { %1248 = vmatpush1.bf16.msra.mxu0 %v4162_v48  ;;  %3903 = vmatpush3.bf16.msra.mxu1 %v4241_v14  ;;  %v4217_v48 = vld [vmem:[#allocation4 + $0x258] ss:$12 sps:$4 sm:$0xff]   ;;  %v4334_v14 = vld [vmem:[#allocation6 + $0x4] ss:$12 sps:$4 sm:$0xff]  }
  0xa3   :  { %1249 = vmatprep.subr.bf16.mxu0 %v4163_v49  ;;  %3904 = vmatprep.subr.bf16.mxu1 %v4245_v16  ;;  %v4224_v49 = vld [vmem:[#allocation4 + $0x274] ss:$12 sps:$4 sm:$0xff]  }
  0xa4   :  { %v4247_v16 = vld [vmem:[#allocation4 + $0x2e8] ss:$12 sps:$4 sm:$0xff]  }
  0xa6   :  { %1250 = vmatpush1.bf16.msra.mxu0 %v4165_v50  ;;  %3905 = vmatpush3.bf16.msra.mxu1 %v4246_v20  ;;  %v4281_v50 = vld [vmem:[#allocation4 + $0x338] ss:$12 sps:$4 sm:$0xff]  }
  0xa7   :  { %1251 = vmatprep.subr.bf16.mxu0 %v4166_v55  ;;  %3906 = vmatprep.subr.bf16.mxu1 %v4250_v21  ;;  %v4286_v55 = vld [vmem:[#allocation4 + $0x350] ss:$12 sps:$4 sm:$0xff]   ;;  %v4332_v20 = vld [vmem:[#allocation6] ss:$12 sps:$4 sm:$0xff]   ;;  %v4337_v21 = vld [vmem:[#allocation6 + $0x1c] ss:$12 sps:$4 sm:$0xff]  }
  0xaa   :  { %1252 = vmatpush1.bf16.msra.mxu0 %v4168_v58  ;;  %3907 = vmatpush3.bf16.msra.mxu1 %v4251_v24  ;;  %v4291_v58 = vld [vmem:[#allocation4 + $0x368] ss:$12 sps:$4 sm:$0xff]   ;;  %v4335_v24 = vld [vmem:[#allocation6 + $0x18] ss:$12 sps:$4 sm:$0xff]  }
  0xab   :  { %1253 = vmatprep.subr.bf16.mxu0 %v4169_v61  ;;  %3908 = vmatprep.subr.bf16.mxu1 %v4255_v25  ;;  %v4232_v61 = vld [vmem:[#allocation4 + $0x2a0] ss:$12 sps:$4 sm:$0xff]  }
  0xac   :  { %v4340_v25 = vld [vmem:[#allocation6 + $0x34] ss:$12 sps:$4 sm:$0xff]  }
  0xae   :  { %1254 = vmatpush1.bf16.msra.mxu0 %v4171_v1  ;;  %3909 = vmatpush3.bf16.msra.mxu1 %v4256_v28  ;;  %v4296_v1 = vld [vmem:[#allocation4 + $0x380] ss:$12 sps:$4 sm:$0xff]   ;;  %v4338_v28 = vld [vmem:[#allocation6 + $0x30] ss:$12 sps:$4 sm:$0xff]  }
  0xaf   :  { %1264 = vmatprep.subr.bf16.mxu0 %v4180_v3  ;;  %3910 = vmatprep.subr.bf16.mxu1 %v4260_v29  ;;  %v4300_v3 = vld [vmem:[#allocation4 + $0x458] ss:$12 sps:$4 sm:$0xff]  }
  0xb0   :  { %v4343_v29 = vld [vmem:[#allocation6 + $0x4c] ss:$12 sps:$4 sm:$0xff]  }
  0xb1   :  { %1256 = vmatmul.mubr.bf16.vlgmr.msra.gmra.mrb[0].mxu0 %v215_v5  ;;  %v206_v5 = vcombine.high %v183_v0, %v197_v2 }
  0xb2   :  { %1265 = vmatpush1.bf16.msra.mxu0 %v4178_v7  ;;  %1296 = vmatprep.mubr.bf16.mxu0 %v218_v8  ;;  %v4301_v7 = vld [vmem:[#allocation4 + $0x398] ss:$12 sps:$4 sm:$0xff]  }
  0xb3   :  { %1266 = vmatprep.subr.bf16.mxu0 %v4183_v9  ;;  %3911 = vmatpush3.bf16.msra.mxu1 %v4261_v32  ;;  %v220_v8 = vpack.c.bf16 %v206_v5, %v206_v5  ;;  %v4305_v9 = vld [vmem:[#allocation4 + $0x470] ss:$12 sps:$4 sm:$0xff]   ;;  %v4341_v32 = vld [vmem:[#allocation6 + $0x48] ss:$12 sps:$4 sm:$0xff]   ;;  %v4772_v5 = vmov 0.0  }
  0xb4   :  { %3912 = vmatprep.subr.bf16.mxu1 %v4265_v33  ;;  %v4267_v33 = vld [vmem:[#allocation4 + $0x348] ss:$12 sps:$4 sm:$0xff]  }
  0xb6   :  { %1267 = vmatpush1.bf16.msra.mxu0 %v4181_v12  ;;  %v205_v12 = vcombine.low %v183_v0, %v197_v2  ;;  %v4315_v0 = vld [vmem:[#allocation2 + $0x28] ss:$14 sps:$4 sm:$0x33]  }
  0xb7   :  { %1268 = vmatprep.subr.bf16.mxu0 %v4186_v13  ;;  %3913 = vmatpush3.bf16.msra.mxu1 %v4266_v36  ;;  %v4306_v13 = vld [vmem:[#allocation4 + $0x3b0] ss:$12 sps:$4 sm:$0xff]  }
  0xb8   :  { %3920 = vmatprep.subr.bf16.mxu1 %v4270_v38  ;;  %v4279_v36 = vld [vmem:[#allocation4 + $0x37c] ss:$12 sps:$4 sm:$0xff]   ;;  %v4284_v38 = vld [vmem:[#allocation4 + $0x394] ss:$12 sps:$4 sm:$0xff]  }
  0xba   :  { %1269 = vmatpush1.bf16.msra.mxu0 %v4184_v17  ;;  %1460 = vmatmul.mubr.bf16.vlgmr.msra.gmra.mrb[4].mxu1 %v4940_v42  ;;  %v4254_v17 = vld [vmem:[#allocation4 + $0x304] ss:$12 sps:$4 sm:$0xff]  }
  0xbb   :  { %1270 = vmatprep.subr.bf16.mxu0 %v4189_v19  ;;  %3921 = vmatpush3.bf16.msra.mxu1 %v4271_v41  ;;  %v4945_v19 = vpack.c.bf16 %v205_v12, %v205_v12  ;;  %v4282_v41 = vld [vmem:[#allocation4 + $0x390] ss:$12 sps:$4 sm:$0xff]   ;;  %v4359_v12 = vld [vmem:[#allocation6 + $0xc8] ss:$12 sps:$4 sm:$0xff]  }
  0xbc   :  { %3922 = vmatprep.subr.bf16.mxu1 %v4275_v43  ;;  %1499 = vmatprep.mubr.bf16.mxu1 %v220_v8  ;;  %v4287_v43 = vld [vmem:[#allocation4 + $0x3a8] ss:$12 sps:$4 sm:$0xff]  }
  0xbe   :  { %1271 = vmatpush1.bf16.msra.mxu0 %v4187_v22  ;;  %v4252_v22 = vld [vmem:[#allocation4 + $0x300] ss:$12 sps:$4 sm:$0xff]  }
  0xbf   :  { %1272 = vmatprep.subr.bf16.mxu0 %v4194_v23  ;;  %3923 = vmatpush3.bf16.msra.mxu1 %v4276_v46  ;;  %v4259_v23 = vld [vmem:[#allocation4 + $0x31c] ss:$12 sps:$4 sm:$0xff]  }
  0xc0   :  { %3924 = vmatprep.subr.bf16.mxu1 %v4280_v47  ;;  %v4299_v46 = vld [vmem:[#allocation4 + $0x3dc] ss:$12 sps:$4 sm:$0xff]   ;;  %v4297_v47 = vld [vmem:[#allocation4 + $0x3d8] ss:$12 sps:$4 sm:$0xff]  }
  0xc2   :  { %1273 = vmatpush1.bf16.msra.mxu0 %v4192_v26  ;;  %v4257_v26 = vld [vmem:[#allocation4 + $0x318] ss:$12 sps:$4 sm:$0xff]  }
  0xc3   :  { %1274 = vmatprep.subr.bf16.mxu0 %v4199_v27  ;;  %3925 = vmatpush3.bf16.msra.mxu1 %v4281_v50  ;;  %v4264_v27 = vld [vmem:[#allocation4 + $0x334] ss:$12 sps:$4 sm:$0xff]   ;;  %v4309_v50 = vld [vmem:[#allocation4 + $0x40c] ss:$12 sps:$4 sm:$0xff]  }
  0xc4   :  { %3926 = vmatprep.subr.bf16.mxu1 %v4285_v51  ;;  %v4307_v51 = vld [vmem:[#allocation4 + $0x408] ss:$12 sps:$4 sm:$0xff]  }
  0xc6   :  { %1275 = vmatpush1.bf16.msra.mxu0 %v4197_v30  ;;  %v4262_v30 = vld [vmem:[#allocation4 + $0x330] ss:$12 sps:$4 sm:$0xff]  }
  0xc7   :  { %1276 = vmatprep.subr.bf16.mxu0 %v4204_v31  ;;  %3927 = vmatpush3.bf16.msra.mxu1 %v4286_v55  ;;  %v4269_v31 = vld [vmem:[#allocation4 + $0x34c] ss:$12 sps:$4 sm:$0xff]  }
  0xc8   :  { %3928 = vmatprep.subr.bf16.mxu1 %v4290_v56  ;;  %v4319_v55 = vld [vmem:[#allocation4 + $0x438] ss:$12 sps:$4 sm:$0xff]   ;;  %v4324_v56 = vld [vmem:[#allocation4 + $0x454] ss:$12 sps:$4 sm:$0xff]  }
  0xca   :  { %1277 = vmatpush1.bf16.msra.mxu0 %v4202_v34  ;;  %v4274_v34 = vld [vmem:[#allocation4 + $0x364] ss:$12 sps:$4 sm:$0xff]  }
  0xcb   :  { %1278 = vmatprep.subr.bf16.mxu0 %v4209_v35  ;;  %3929 = vmatpush3.bf16.msra.mxu1 %v4291_v58  ;;  %v4272_v35 = vld [vmem:[#allocation4 + $0x360] ss:$12 sps:$4 sm:$0xff]  }
  0xcc   :  { %3930 = vmatprep.subr.bf16.mxu1 %v4295_v59  ;;  %v4349_v58 = vld [vmem:[#allocation6 + $0x7c] ss:$12 sps:$4 sm:$0xff]   ;;  %v4322_v59 = vld [vmem:[#allocation4 + $0x450] ss:$12 sps:$4 sm:$0xff]  }
  0xce   :  { %1279 = vmatpush1.bf16.msra.mxu0 %v4207_v39  ;;  %v4344_v39 = vld [vmem:[#allocation6 + $0x60] ss:$12 sps:$4 sm:$0xff]  }
  0xcf   :  { %1280 = vmatprep.subr.bf16.mxu0 %v4214_v40  ;;  %3931 = vmatpush3.bf16.msra.mxu1 %v4296_v1  ;;  %v4346_v40 = vld [vmem:[#allocation6 + $0x64] ss:$12 sps:$4 sm:$0xff]   ;;  %v4328_v1 = vld [vmem:[#allocation4 + $0x480] ss:$12 sps:$4 sm:$0xff]  }
  0xd0   :  { %3932 = vmatprep.subr.bf16.mxu1 %v4300_v3  ;;  %v204_v3 = vrot.slane %v4315_v0, %v4918_v18 }
  0xd2   :  { %1281 = vmatpush1.bf16.msra.mxu0 %v4212_v44  ;;  %v4294_v44 = vld [vmem:[#allocation4 + $0x3c4] ss:$12 sps:$4 sm:$0xff]  }
  0xd3   :  { %1282 = vmatprep.subr.bf16.mxu0 %v4219_v45  ;;  %3933 = vmatpush3.bf16.msra.mxu1 %v4301_v7  ;;  %v4292_v45 = vld [vmem:[#allocation4 + $0x3c0] ss:$12 sps:$4 sm:$0xff]   ;;  %v4331_v7 = vld [vmem:[#allocation4 + $0x488] ss:$12 sps:$4 sm:$0xff]  }
  0xd4   :  { %3934 = vmatprep.subr.bf16.mxu1 %v4305_v9  ;;  %v4352_v9 = vld [vmem:[#allocation6 + $0x94] ss:$12 sps:$4 sm:$0xff]  }
  0xd6   :  { %1283 = vmatpush1.bf16.msra.mxu0 %v4217_v48  ;;  %v4304_v48 = vld [vmem:[#allocation4 + $0x3f4] ss:$12 sps:$4 sm:$0xff]  }
  0xd7   :  { %1284 = vmatprep.subr.bf16.mxu0 %v4224_v49  ;;  %3935 = vmatpush3.bf16.msra.mxu1 %v4306_v13  ;;  %v4302_v49 = vld [vmem:[#allocation4 + $0x3f0] ss:$12 sps:$4 sm:$0xff]   ;;  %v4360_v13 = vld [vmem:[#allocation6 + $0x8] ss:$12 sps:$4 sm:$0xff]  }
  0xd8   :  { %2056 = vmatprep.subr.bf16.mxu1 %v4334_v14  ;;  %v4358_v14 = vld [vmem:[#allocation6 + $0xc4] ss:$12 sps:$4 sm:$0xff]  }
  0xda   :  { %1285 = vmatpush1.bf16.msra.mxu0 %v4222_v52  ;;  %1500 = vmatmul.mubr.bf16.vlgmr.msra.gmra.mrb[8].mxu1 %v4945_v19  ;;  %v4318_v52 = vld [vmem:[#allocation4 + $0x424] ss:$12 sps:$4 sm:$0xff]  }
  0xdb   :  { %1286 = vmatprep.subr.bf16.mxu0 %v4229_v53  ;;  %2057 = vmatpush1.bf16.msra.mxu1 %v4332_v20  ;;  %v4316_v53 = vld [vmem:[#allocation4 + $0x420] ss:$12 sps:$4 sm:$0xff]   ;;  %v4369_v20 = vld [vmem:[#allocation6 + $0xf8] ss:$12 sps:$4 sm:$0xff]  }
  0xdc   :  { %2058 = vmatprep.subr.bf16.mxu1 %v4337_v21  ;;  %v4363_v21 = vld [vmem:[#allocation6 + $0xdc] ss:$12 sps:$4 sm:$0xff]  }
  0xde   :  { %1287 = vmatpush1.bf16.msra.mxu0 %v4227_v54  ;;  %v4321_v54 = vld [vmem:[#allocation4 + $0x43c] ss:$12 sps:$4 sm:$0xff]  }
  0xdf   :  { %1288 = vmatprep.subr.bf16.mxu0 %v4234_v57  ;;  %2059 = vmatpush1.bf16.msra.mxu1 %v4335_v24  ;;  %v4347_v57 = vld [vmem:[#allocation6 + $0x78] ss:$12 sps:$4 sm:$0xff]  }
  0xe0   :  { %2060 = vmatprep.subr.bf16.mxu1 %v4340_v25  ;;  %v4370_v24 = vld [vmem:[#allocation6 + $0x38] ss:$12 sps:$4 sm:$0xff]   ;;  %v4374_v25 = vld [vmem:[#allocation6 + $0x110] ss:$12 sps:$4 sm:$0xff]  }
  0xe2   :  { %1289 = vmatpush1.bf16.msra.mxu0 %v4232_v61  ;;  %v4325_v61 = vld [vmem:[#allocation4 + $0x468] ss:$12 sps:$4 sm:$0xff]  }
  0xe3   :  { %1290 = vmatprep.subr.bf16.mxu0 %v4239_v63  ;;  %2061 = vmatpush1.bf16.msra.mxu1 %v4338_v28  ;;  %v4312_v63 = vld [vmem:[#allocation2 + $0xc] ss:$14 sps:$4 sm:$0x33]  }
  0xe4   :  { %2062 = vmatprep.subr.bf16.mxu1 %v4343_v29  ;;  %v190_v2 = vrot.slane %v4312_v63, %v4918_v18  ;;  %v4350_v18 = vld [vmem:[#allocation6 + $0x90] ss:$12 sps:$4 sm:$0xff]   ;;  %v4379_v28 = vld [vmem:[#allocation6 + $0x128] ss:$12 sps:$4 sm:$0xff]   ;;  %v4373_v29 = vld [vmem:[#allocation6 + $0x10c] ss:$12 sps:$4 sm:$0xff]  }
  0xe6   :  { %1291 = vmatpush1.bf16.msra.mxu0 %v4237_v4  ;;  %v4771_v4 = vmov 0  }
  0xe7   :  { %1292 = vmatprep.subr.bf16.mxu0 %v4244_v6  ;;  %2063 = vmatpush1.bf16.msra.mxu1 %v4341_v32  ;;  %v207_v6 = vcombine.low %v190_v2, %v204_v3  ;;  %v4384_v32 = vld [vmem:[#allocation6 + $0x140] ss:$12 sps:$4 sm:$0xff]  }
  0xe8   :  { %2064 = vmatprep.subr.bf16.mxu1 %v4346_v40 }
  0xea   :  { %1293 = vmatpush1.bf16.msra.mxu0 %v4242_v10  ;;  %v4355_v10 = vld [vmem:[#allocation6 + $0xac] ss:$12 sps:$4 sm:$0xff]  }
  0xeb   :  { %1294 = vmatprep.subr.bf16.mxu0 %v4249_v11  ;;  %2065 = vmatpush1.bf16.msra.mxu1 %v4344_v39  ;;  %v4353_v11 = vld [vmem:[#allocation6 + $0xa8] ss:$12 sps:$4 sm:$0xff]  }
  0xec   :  { %2066 = vmatprep.subr.bf16.mxu1 %v4349_v58 }
  0xee   :  { %1295 = vmatpush1.bf16.msra.mxu0 %v4247_v16  ;;  %v4364_v16 = vld [vmem:[#allocation6 + $0xe0] ss:$12 sps:$4 sm:$0xff]  }
  0xef   :  { %1305 = vmatprep.subr.bf16.mxu0 %v4254_v17  ;;  %2067 = vmatpush1.bf16.msra.mxu1 %v4347_v57  ;;  %v4365_v17 = vld [vmem:[#allocation6 + $0x20] ss:$12 sps:$4 sm:$0xff]  }
  0xf0   :  { %2068 = vmatprep.subr.bf16.mxu1 %v4352_v9 }
  0xf1   :  { %1297 = vmatmul.mubr.bf16.vlgmr.msra.gmra.mrb[0].mxu0 %v4940_v42  ;;  %v4289_v42 = vld [vmem:[#allocation4 + $0x3ac] ss:$12 sps:$4 sm:$0xff]  }
  0xf2   :  { %1306 = vmatpush1.bf16.msra.mxu0 %v4252_v22  ;;  %1337 = vmatprep.mubr.bf16.mxu0 %v220_v8  ;;  %v221_v8 = vpack.c.bf16 %v207_v6, %v207_v6  ;;  %v4361_v22 = vld [vmem:[#allocation6 + $0xd8] ss:$12 sps:$4 sm:$0xff]  }
  0xf3   :  { %1307 = vmatprep.subr.bf16.mxu0 %v4259_v23  ;;  %2069 = vmatpush1.bf16.msra.mxu1 %v4350_v18  ;;  %v4368_v23 = vld [vmem:[#allocation6 + $0xf4] ss:$12 sps:$4 sm:$0xff]   ;;  %v4430_v6 = vld [vmem:[#allocation7 + $0x4] ss:$12 sps:$4 sm:$0xff]  }
  0xf4   :  { %2070 = vmatprep.subr.bf16.mxu1 %v4355_v10 }
  0xf6   :  { %1308 = vmatpush1.bf16.msra.mxu0 %v4257_v26  ;;  %v4375_v26 = vld [vmem:[#allocation6 + $0x50] ss:$12 sps:$4 sm:$0xff]  }
  0xf7   :  { %1309 = vmatprep.subr.bf16.mxu0 %v4264_v27  ;;  %2071 = vmatpush1.bf16.msra.mxu1 %v4353_v11  ;;  %v4366_v27 = vld [vmem:[#allocation6 + $0xf0] ss:$12 sps:$4 sm:$0xff]  }
  0xf8   :  { %2072 = vmatprep.subr.bf16.mxu1 %v4358_v14 }
  0xfa   :  { %1310 = vmatpush1.bf16.msra.mxu0 %v4262_v30  ;;  %v4380_v30 = vld [vmem:[#allocation6 + $0x68] ss:$12 sps:$4 sm:$0xff]  }
  0xfb   :  { %1311 = vmatprep.subr.bf16.mxu0 %v4269_v31  ;;  %v4371_v31 = vld [vmem:[#allocation6 + $0x108] ss:$12 sps:$4 sm:$0xff]  }
  0xfe   :  { %1312 = vmatpush1.bf16.msra.mxu0 %v4267_v33  ;;  %v4378_v33 = vld [vmem:[#allocation6 + $0x124] ss:$12 sps:$4 sm:$0xff]  }
  0xff   :  { %1313 = vmatprep.subr.bf16.mxu0 %v4274_v34  ;;  %v4385_v34 = vld [vmem:[#allocation6 + $0x80] ss:$12 sps:$4 sm:$0xff]  }
 0x102   :  { %1314 = vmatpush1.bf16.msra.mxu0 %v4272_v35  ;;  %v4376_v35 = vld [vmem:[#allocation6 + $0x120] ss:$12 sps:$4 sm:$0xff]  }
 0x103   :  { %1315 = vmatprep.subr.bf16.mxu0 %v4279_v36  ;;  %v4383_v36 = vld [vmem:[#allocation6 + $0x13c] ss:$12 sps:$4 sm:$0xff]  }
 0x106   :  { %1316 = vmatpush1.bf16.msra.mxu0 %v4277_v37  ;;  %v4381_v37 = vld [vmem:[#allocation6 + $0x138] ss:$12 sps:$4 sm:$0xff]  }
 0x107   :  { %1317 = vmatprep.subr.bf16.mxu0 %v4284_v38 }
 0x10a   :  { %1318 = vmatpush1.bf16.msra.mxu0 %v4282_v41 }
 0x10b   :  { %1319 = vmatprep.subr.bf16.mxu0 %v4289_v42 }
 0x10e   :  { %1320 = vmatpush1.bf16.msra.mxu0 %v4287_v43  ;;  %v4388_v43 = vld [vmem:[#allocation6 + $0x154] ss:$12 sps:$4 sm:$0xff]  }
 0x10f   :  { %1321 = vmatprep.subr.bf16.mxu0 %v4294_v44  ;;  %v4386_v44 = vld [vmem:[#allocation6 + $0x150] ss:$12 sps:$4 sm:$0xff]  }
 0x112   :  { %1322 = vmatpush1.bf16.msra.mxu0 %v4292_v45  ;;  %v4389_v45 = vld [vmem:[#allocation6 + $0x158] ss:$12 sps:$4 sm:$0xff]  }
 0x113   :  { %1323 = vmatprep.subr.bf16.mxu0 %v4299_v46  ;;  %v4390_v46 = vld [vmem:[#allocation6 + $0x98] ss:$12 sps:$4 sm:$0xff]  }
 0x116   :  { %1324 = vmatpush1.bf16.msra.mxu0 %v4297_v47  ;;  %v4393_v47 = vld [vmem:[#allocation6 + $0x16c] ss:$12 sps:$4 sm:$0xff]  }
 0x117   :  { %1325 = vmatprep.subr.bf16.mxu0 %v4304_v48  ;;  %v4391_v48 = vld [vmem:[#allocation6 + $0x168] ss:$12 sps:$4 sm:$0xff]  }
 0x11a   :  { %1326 = vmatpush1.bf16.msra.mxu0 %v4302_v49  ;;  %v4394_v49 = vld [vmem:[#allocation6 + $0x170] ss:$12 sps:$4 sm:$0xff]  }
 0x11b   :  { %1327 = vmatprep.subr.bf16.mxu0 %v4309_v50  ;;  %v4395_v50 = vld [vmem:[#allocation6 + $0xb0] ss:$12 sps:$4 sm:$0xff]  }
 0x11e   :  { %1328 = vmatpush1.bf16.msra.mxu0 %v4307_v51  ;;  %v4398_v51 = vld [vmem:[#allocation6 + $0x184] ss:$12 sps:$4 sm:$0xff]  }
 0x11f   :  { %1329 = vmatprep.subr.bf16.mxu0 %v4318_v52  ;;  %v4957_v52 = vsub.s32 2, %v4915_v15 }
 0x122   :  { %1330 = vmatpush1.bf16.msra.mxu0 %v4316_v53  ;;  %v418_v53 = vld [vmem:[%s5027_s2] sm:$0x7] }
 0x123   :  { %1331 = vmatprep.subr.bf16.mxu0 %v4321_v54  ;;  %v431_v54 = vrot.slane %v418_v53, %v4957_v52 }
 0x126   :  { %1332 = vmatpush1.bf16.msra.mxu0 %v4319_v55 }
 0x127   :  { %1333 = vmatprep.subr.bf16.mxu0 %v4324_v56 }
 0x12a   :  { %1334 = vmatpush1.bf16.msra.mxu0 %v4322_v59 }
 0x12b   :  { %1335 = vmatprep.subr.bf16.mxu0 %v4327_v60 }
 0x12e   :  { %1336 = vmatpush1.bf16.msra.mxu0 %v4325_v61 }
 0x12f   :  { %1346 = vmatprep.subr.bf16.mxu0 %v4330_v62 }
 0x131   :  { %1338 = vmatmul.mubr.bf16.vlgmr.msra.gmra.mrb[0].mxu0 %v4945_v19  ;;  %v4356_v19 = vld [vmem:[#allocation6 + $0xc0] ss:$12 sps:$4 sm:$0xff]  }
 0x132   :  { %1347 = vmatpush1.bf16.msra.mxu0 %v4328_v1  ;;  %1378 = vmatprep.mubr.bf16.mxu0 %v4771_v4 }
 0x133   :  { %4028 = vmatprep.subr.bf16.mxu0 %v4772_v5  ;;  %2073 = vmatpush1.bf16.msra.mxu1 %v4356_v19 }
 0x134   :  { %2074 = vmatprep.subr.bf16.mxu1 %v4363_v21 }
 0x137   :  { %2075 = vmatpush1.bf16.msra.mxu1 %v4361_v22 }
 0x138   :  { %2076 = vmatprep.subr.bf16.mxu1 %v4368_v23  ;;  %v4396_v23 = vld [vmem:[#allocation6 + $0x180] ss:$12 sps:$4 sm:$0xff]  }
 0x13b   :  { %2077 = vmatpush1.bf16.msra.mxu1 %v4366_v27 }
 0x13c   :  { %2078 = vmatprep.subr.bf16.mxu1 %v4373_v29  ;;  %v4433_v29 = vld [vmem:[#allocation7 + $0x1c] ss:$12 sps:$4 sm:$0xff]  }
 0x13d   :  { %3664 = vmatmul.mubr.msk.bf16.vlgmr.msra.gmra.mrb[0].mxu0 %vm1219_vm0, %v221_v8 }
 0x13e   :  { %4029 = vmatpush3.bf16.msra.mxu0 %v4331_v7  ;;  %4030 = vmatprep.mubr.msk.bf16.mxu0 %vm4773_vm1, %v4772_v5  ;;  %v4964_v7 = vsub.s32 0, %v4915_v15 }
 0x13f   :  { %3944 = vmatprep.subr.bf16.mxu0 %v4359_v12  ;;  %2079 = vmatpush1.bf16.msra.mxu1 %v4371_v31  ;;  %v4399_v31 = vld [vmem:[#allocation6 + $0x198] ss:$12 sps:$4 sm:$0xff]  }
 0x140   :  { %2080 = vmatprep.subr.bf16.mxu1 %v4378_v33  ;;  %v423_v18 = vrot.slane %v418_v53, %v4964_v7  ;;  %v4404_v33 = vld [vmem:[#allocation6 + $0x1b4] ss:$12 sps:$4 sm:$0xff]  }
 0x143   :  { %2081 = vmatpush1.bf16.msra.mxu1 %v4376_v35  ;;  %v4436_v35 = vld [vmem:[#allocation7 + $0x34] ss:$12 sps:$4 sm:$0xff]  }
 0x144   :  { %2082 = vmatprep.subr.bf16.mxu1 %v4383_v36  ;;  %v4402_v36 = vld [vmem:[#allocation6 + $0x1b0] ss:$12 sps:$4 sm:$0xff]  }
 0x145   :  { %4031 = vmatmul.mubr.msk.bf16.vlgmr.msra.gmra.mrb[4].mxu0 %vm1219_vm0, %v221_v8  ;;  %v4967_v8 = vsub.s32 1, %v4915_v15 }
 0x146   :  { %3945 = vmatpush3.bf16.msra.mxu0 %v4360_v13 }
 0x147   :  { %3946 = vmatprep.subr.bf16.mxu0 %v4364_v16  ;;  %2083 = vmatpush1.bf16.msra.mxu1 %v4381_v37  ;;  %v427_v9 = vrot.slane %v418_v53, %v4967_v8  ;;  %v4407_v37 = vld [vmem:[#allocation6 + $0x1cc] ss:$12 sps:$4 sm:$0xff]  }
 0x148   :  { %2084 = vmatprep.subr.bf16.mxu1 %v4388_v43  ;;  %v4442_v43 = vld [vmem:[#allocation7 + $0x64] ss:$12 sps:$4 sm:$0xff]   ;;  %v4419_v53 = vld [vmem:[#allocation6 + $0x22c] ss:$12 sps:$4 sm:$0xff]  }
 0x14a   :  { %3947 = vmatpush3.bf16.msra.mxu0 %v4365_v17 }
 0x14b   :  { %3948 = vmatprep.subr.bf16.mxu0 %v4369_v20  ;;  %2085 = vmatpush1.bf16.msra.mxu1 %v4386_v44  ;;  %v4408_v44 = vld [vmem:[#allocation6 + $0x1e0] ss:$12 sps:$4 sm:$0xff]  }
 0x14c   :  { %2086 = vmatprep.subr.bf16.mxu1 %v4393_v47  ;;  %v4445_v47 = vld [vmem:[#allocation7 + $0x7c] ss:$12 sps:$4 sm:$0xff]  }
 0x14e   :  { %3949 = vmatpush3.bf16.msra.mxu0 %v4370_v24 }
 0x14f   :  { %3950 = vmatprep.subr.bf16.mxu0 %v4374_v25  ;;  %2087 = vmatpush1.bf16.msra.mxu1 %v4391_v48  ;;  %v4401_v25 = vld [vmem:[#allocation6 + $0x19c] ss:$12 sps:$4 sm:$0xff]   ;;  %v4411_v48 = vld [vmem:[#allocation6 + $0x1f8] ss:$12 sps:$4 sm:$0xff]  }
 0x150   :  { %2097 = vmatprep.subr.bf16.mxu1 %v4398_v51  ;;  %v4414_v51 = vld [vmem:[#allocation6 + $0x210] ss:$12 sps:$4 sm:$0xff]  }
 0x152   :  { %3951 = vmatpush3.bf16.msra.mxu0 %v4375_v26  ;;  %v4428_v26 = vld [vmem:[#allocation7] ss:$12 sps:$4 sm:$0xff]  }
 0x153   :  { %3952 = vmatprep.subr.bf16.mxu0 %v4379_v28 }
 0x156   :  { %3953 = vmatpush3.bf16.msra.mxu0 %v4380_v30 }
 0x157   :  { %3954 = vmatprep.subr.bf16.mxu0 %v4384_v32 }
 0x15a   :  { %3955 = vmatpush3.bf16.msra.mxu0 %v4385_v34  ;;  %v4431_v34 = vld [vmem:[#allocation7 + $0x18] ss:$12 sps:$4 sm:$0xff]  }
 0x15b   :  { %3956 = vmatprep.subr.bf16.mxu0 %v4389_v45  ;;  %v4413_v45 = vld [vmem:[#allocation6 + $0x1fc] ss:$12 sps:$4 sm:$0xff]  }
 0x15e   :  { %3957 = vmatpush3.bf16.msra.mxu0 %v4390_v46  ;;  %v4440_v46 = vld [vmem:[#allocation7 + $0x60] ss:$12 sps:$4 sm:$0xff]  }
 0x15f   :  { %3958 = vmatprep.subr.bf16.mxu0 %v4394_v49  ;;  %v4416_v49 = vld [vmem:[#allocation6 + $0x214] ss:$12 sps:$4 sm:$0xff]  }
 0x162   :  { %3959 = vmatpush3.bf16.msra.mxu0 %v4395_v50  ;;  %v4443_v50 = vld [vmem:[#allocation7 + $0x78] ss:$12 sps:$4 sm:$0xff]  }
 0x163   :  { %2727 = vmatprep.subr.bf16.mxu0 %v4430_v6  ;;  %v4449_v6 = vld [vmem:[#allocation7 + $0xa8] ss:$12 sps:$4 sm:$0xff]  }
 0x16c   :  { %v3892_v38 = vpop.f32.mrb[0].mxu1 }
 0x16d   :  { %v3893_v39 = vpop.f32.mrb[1].mxu1 }
 0x16e   :  { %v3894_v40 = vadd.f32 %v3893_v39, %v3892_v38  ;;  %v3895_v41 = vpop.f32.mrb[2].mxu1  ;;  %v4434_v38 = vld [vmem:[#allocation7 + $0x30] ss:$12 sps:$4 sm:$0xff]   ;;  %v4439_v39 = vld [vmem:[#allocation7 + $0x4c] ss:$12 sps:$4 sm:$0xff]  }
 0x16f   :  { %v3896_v42 = vpop.f32.mrb[3].mxu1  ;;  %v4410_v41 = vld [vmem:[#allocation6 + $0x1e4] ss:$12 sps:$4 sm:$0xff]  }
 0x170   :  { %v1422_v55 = vadd.f32 %v3894_v40, %v431_v54  ;;  %v4405_v40 = vld [vmem:[#allocation6 + $0x1c8] ss:$12 sps:$4 sm:$0xff]  }
 0x171   :  { %v4437_v42 = vld [vmem:[#allocation7 + $0x48] ss:$12 sps:$4 sm:$0xff]  }
 0x18d   :  { %v3914_v56 = vpop.f32.mrb[4].mxu1 }
 0x18e   :  { %v3915_v57 = vpop.f32.mrb[5].mxu1 }
 0x18f   :  { %v3916_v58 = vadd.f32 %v3915_v57, %v3914_v56  ;;  %v3917_v59 = vpop.f32.mrb[6].mxu1  ;;  %v4420_v57 = vld [vmem:[#allocation6 + $0x188] ss:$12 sps:$4 sm:$0xff]  }
 0x190   :  { %v3918_v60 = vpop.f32.mrb[7].mxu1  ;;  %v4421_v59 = vld [vmem:[#allocation6 + $0x1a0] ss:$12 sps:$4 sm:$0xff]  }
 0x191   :  { %v1462_v61 = vadd.f32 %v3916_v58, %v1422_v55  ;;  %v4417_v55 = vld [vmem:[#allocation6 + $0x228] ss:$12 sps:$4 sm:$0xff]   ;;  %v4422_v60 = vld [vmem:[#allocation6 + $0x1b8] ss:$12 sps:$4 sm:$0xff]  }
 0x1ad   :  { %v3936_v62 = vpop.f32.mrb[8].mxu1 }
 0x1ae   :  { %v3937_v63 = vpop.f32.mrb[9].mxu1 }
 0x1af   :  { %v3938_v0 = vadd.f32 %v3937_v63, %v3936_v62  ;;  %v3939_v1 = vpop.f32.mrb[10].mxu1  ;;  %v4424_v62 = vld [vmem:[#allocation6 + $0x1e8] ss:$12 sps:$4 sm:$0xff]   ;;  %v4425_v63 = vld [vmem:[#allocation6 + $0x200] ss:$12 sps:$4 sm:$0xff]  }
 0x1b0   :  { %v3940_v2 = vpop.f32.mrb[11].mxu1  ;;  %v4427_v1 = vld [vmem:[#allocation6 + $0x230] ss:$12 sps:$4 sm:$0xff]  }
 0x1b1   :  { %v1502_v3 = vadd.f32 %v3938_v0, %v1462_v61  ;;  %v4423_v61 = vld [vmem:[#allocation6 + $0x1d0] ss:$12 sps:$4 sm:$0xff]   ;;  %v4426_v0 = vld [vmem:[#allocation6 + $0x218] ss:$12 sps:$4 sm:$0xff]   ;;  %v4448_v2 = vld [vmem:[#allocation7 + $0x94] ss:$12 sps:$4 sm:$0xff]  }
 0x210   :  { %v1380_v10 = vpop.f32.mrb[0].mxu0 }
 0x211   :  { %v4074_v11 = vadd.f32 %v1380_v10, %v423_v18  ;;  %v1382_v12 = vpop.f32.mrb[1].mxu0  ;;  %v4451_v18 = vld [vmem:[#allocation7 + $0xac] ss:$12 sps:$4 sm:$0xff]   ;;  %v4455_v10 = vld [vmem:[#allocation7 + $0xc8] ss:$12 sps:$4 sm:$0xff]  }
 0x212   :  { %v4075_v13 = vadd.f32 %v1382_v12, %v427_v9  ;;  %v1384_v14 = vpop.f32.mrb[2].mxu0  ;;  %v4454_v9 = vld [vmem:[#allocation7 + $0xc4] ss:$12 sps:$4 sm:$0xff]   ;;  %v4460_v12 = vld [vmem:[#allocation7 + $0xe0] ss:$12 sps:$4 sm:$0xff]  }
 0x213   :  { %vm1547_vm2 = vcmp.gt.f32.partialorder %v4074_v11, 0.0  ;;  %v1550_v16 = vmul.f32 0.01, %v4074_v11  ;;  %v1385_v17 = vpop.f32.mrb[3].mxu0  ;;  %v4459_v14 = vld [vmem:[#allocation7 + $0xdc] ss:$12 sps:$4 sm:$0xff]  }
 0x214   :  { %vm1548_vm3 = vcmp.gt.f32.partialorder %v4075_v13, 0.0  ;;  %v1551_v19 = vmul.f32 0.01, %v4075_v13  ;;  %v4465_v17 = vld [vmem:[#allocation7 + $0xf8] ss:$12 sps:$4 sm:$0xff]  }
 0x215   :  { %v1553_v20 = vsel %vm1547_vm2, %v4074_v11, %v1550_v16  ;;  %v4456_v11 = vld [vmem:[#allocation7 + $0x8] ss:$12 sps:$4 sm:$0xff]   ;;  %v4461_v16 = vld [vmem:[#allocation7 + $0x20] ss:$12 sps:$4 sm:$0xff]  }
 0x216   :  { %v1554_v21 = vsel %vm1548_vm3, %v4075_v13, %v1551_v19  ;;  %v1556_v15 = vpack.c.bf16 %v1553_v20, %v1553_v20  ;;  %v4452_v13 = vld [vmem:[#allocation7 + $0xc0] ss:$12 sps:$4 sm:$0xff]   ;;  %v4457_v19 = vld [vmem:[#allocation7 + $0xd8] ss:$12 sps:$4 sm:$0xff]  }
 0x217   :  { %v1557_v22 = vpack.c.bf16 %v1554_v21, %v1554_v21  ;;  %v4464_v20 = vld [vmem:[#allocation7 + $0xf4] ss:$12 sps:$4 sm:$0xff]   ;;  %v4466_v21 = vld [vmem:[#allocation7 + $0x38] ss:$12 sps:$4 sm:$0xff]  }
 0x218   :  { %v1541_v24 = vpop.f32.mrb[4].mxu0 }
 0x219   :  { %v1542_v27 = vadd.f32 %v1541_v24, %v1502_v3  ;;  %2088 = vmatprep.mubr.bf16.mxu1 %v1557_v22  ;;  %2170 = vmatprep.mubr.bf16.mxu0 %v1557_v22  ;;  %v4032_v28 = vpop.f32.mrb[5].mxu0  ;;  %v4446_v3 = vld [vmem:[#allocation7 + $0x90] ss:$12 sps:$4 sm:$0xff]  }
 0x21a   :  { %2089 = vmatmul.mubr.bf16.vlgmr.msra.gmra.mrb[12].mxu1 %v1556_v15  ;;  %2171 = vmatmul.mubr.bf16.vlgmr.msra.gmra.mrb[8].mxu0 %v1556_v15  ;;  %v1544_v30 = vpop.f32.mrb[6].mxu0  ;;  %v4470_v22 = vld [vmem:[#allocation7 + $0x110] ss:$12 sps:$4 sm:$0xff]   ;;  %v4469_v15 = vld [vmem:[#allocation7 + $0x10c] ss:$12 sps:$4 sm:$0xff]  }
 0x21b   :  { %2098 = vmatpush1.bf16.msra.mxu1 %v4396_v23  ;;  %v4033_v32 = vpop.f32.mrb[7].mxu0  ;;  %2129 = vmatprep.mubr.bf16.mxu1 %v4771_v4  ;;  %v1552_v54 = vmul.f32 0.01, %v1542_v27  ;;  %vm1549_vm4 = vcmp.gt.f32.partialorder %v1542_v27, 0.0  ;;  %v4462_v23 = vld [vmem:[#allocation7 + $0xf0] ss:$12 sps:$4 sm:$0xff]  }
 0x21c   :  { %2099 = vmatprep.subr.bf16.mxu1 %v4401_v25  ;;  %2728 = vmatpush1.bf16.msra.mxu0 %v4428_v26  ;;  %v4471_v24 = vld [vmem:[#allocation7 + $0x50] ss:$12 sps:$4 sm:$0xff]   ;;  %v4475_v25 = vld [vmem:[#allocation7 + $0x128] ss:$12 sps:$4 sm:$0xff]   ;;  %v4472_v30 = vld [vmem:[#allocation7 + $0x120] ss:$12 sps:$4 sm:$0xff]  }
 0x21d   :  { %2729 = vmatprep.subr.bf16.mxu0 %v4433_v29  ;;  %v1555_v56 = vsel %vm1549_vm4, %v1542_v27, %v1552_v54  ;;  %v4467_v26 = vld [vmem:[#allocation7 + $0x108] ss:$12 sps:$4 sm:$0xff]   ;;  %v4474_v27 = vld [vmem:[#allocation7 + $0x124] ss:$12 sps:$4 sm:$0xff]   ;;  %v4480_v29 = vld [vmem:[#allocation7 + $0x140] ss:$12 sps:$4 sm:$0xff]  }
 0x21e   :  { %v1558_v58 = vpack.c.bf16 %v1555_v56, %v1555_v56  ;;  %v4476_v28 = vld [vmem:[#allocation7 + $0x68] ss:$12 sps:$4 sm:$0xff]   ;;  %v4481_v32 = vld [vmem:[#allocation7 + $0x80] ss:$12 sps:$4 sm:$0xff]  }
 0x21f   :  { %2100 = vmatpush1.bf16.msra.mxu1 %v4399_v31  ;;  %v4479_v31 = vld [vmem:[#allocation7 + $0x13c] ss:$12 sps:$4 sm:$0xff]  }
 0x220   :  { %2101 = vmatprep.subr.bf16.mxu1 %v4404_v33  ;;  %2730 = vmatpush1.bf16.msra.mxu0 %v4431_v34  ;;  %v4477_v33 = vld [vmem:[#allocation7 + $0x138] ss:$12 sps:$4 sm:$0xff]   ;;  %v4484_v34 = vld [vmem:[#allocation7 + $0x154] ss:$12 sps:$4 sm:$0xff]  }
 0x221   :  { %2731 = vmatprep.subr.bf16.mxu0 %v4436_v35  ;;  %v4485_v35 = vld [vmem:[#allocation7 + $0x158] ss:$12 sps:$4 sm:$0xff]  }
 0x223   :  { %2102 = vmatpush1.bf16.msra.mxu1 %v4402_v36  ;;  %v4482_v36 = vld [vmem:[#allocation7 + $0x150] ss:$12 sps:$4 sm:$0xff]  }
 0x224   :  { %2103 = vmatprep.subr.bf16.mxu1 %v4407_v37  ;;  %2732 = vmatpush1.bf16.msra.mxu0 %v4434_v38  ;;  %v4486_v37 = vld [vmem:[#allocation7 + $0x98] ss:$12 sps:$4 sm:$0xff]  }
 0x225   :  { %2733 = vmatprep.subr.bf16.mxu0 %v4439_v39  ;;  %v4489_v38 = vld [vmem:[#allocation7 + $0x16c] ss:$12 sps:$4 sm:$0xff]   ;;  %v4490_v39 = vld [vmem:[#allocation7 + $0x170] ss:$12 sps:$4 sm:$0xff]  }
 0x227   :  { %2104 = vmatpush1.bf16.msra.mxu1 %v4405_v40  ;;  %v4487_v40 = vld [vmem:[#allocation7 + $0x168] ss:$12 sps:$4 sm:$0xff]  }
 0x228   :  { %2105 = vmatprep.subr.bf16.mxu1 %v4410_v41  ;;  %2734 = vmatpush1.bf16.msra.mxu0 %v4437_v42  ;;  %v4491_v41 = vld [vmem:[#allocation7 + $0xb0] ss:$12 sps:$4 sm:$0xff]  }
 0x229   :  { %2735 = vmatprep.subr.bf16.mxu0 %v4442_v43  ;;  %v4494_v42 = vld [vmem:[#allocation7 + $0x184] ss:$12 sps:$4 sm:$0xff]  }
 0x22b   :  { %2106 = vmatpush1.bf16.msra.mxu1 %v4408_v44 }
 0x22c   :  { %2107 = vmatprep.subr.bf16.mxu1 %v4413_v45  ;;  %2736 = vmatpush1.bf16.msra.mxu0 %v4440_v46 }
 0x22d   :  { %2737 = vmatprep.subr.bf16.mxu0 %v4445_v47 }
 0x22f   :  { %2108 = vmatpush1.bf16.msra.mxu1 %v4411_v48  ;;  %v4988_v48 = vld [vmem:[%s5029_s4] sm:$0x7] }
 0x230   :  { %2109 = vmatprep.subr.bf16.mxu1 %v4416_v49  ;;  %2738 = vmatpush1.bf16.msra.mxu0 %v4443_v50  ;;  %v1660_v49 = vrot.slane %v4988_v48, %v4964_v7  ;;  %v1664_v50 = vrot.slane %v4988_v48, %v4967_v8 }
 0x231   :  { %2739 = vmatprep.subr.bf16.mxu0 %v4448_v2  ;;  %v4498_v2 = vld [vmem:[#allocation7 + $0x19c] ss:$12 sps:$4 sm:$0xff]  }
 0x233   :  { %2110 = vmatpush1.bf16.msra.mxu1 %v4414_v51 }
 0x234   :  { %2111 = vmatprep.subr.bf16.mxu1 %v4419_v53  ;;  %2740 = vmatpush1.bf16.msra.mxu0 %v4446_v3  ;;  %v4496_v3 = vld [vmem:[#allocation7 + $0x198] ss:$12 sps:$4 sm:$0xff]  }
 0x235   :  { %2741 = vmatprep.subr.bf16.mxu0 %v4451_v18  ;;  %v4502_v18 = vld [vmem:[#allocation7 + $0x1b4] ss:$12 sps:$4 sm:$0xff]  }
 0x237   :  { %2112 = vmatpush1.bf16.msra.mxu1 %v4417_v55 }
 0x238   :  { %4034 = vmatprep.subr.bf16.mxu1 %v4772_v5  ;;  %2742 = vmatpush1.bf16.msra.mxu0 %v4449_v6  ;;  %v4499_v6 = vld [vmem:[#allocation7 + $0x1a0] ss:$12 sps:$4 sm:$0xff]  }
 0x239   :  { %2743 = vmatprep.subr.bf16.mxu0 %v4454_v9  ;;  %v4500_v9 = vld [vmem:[#allocation7 + $0x1b0] ss:$12 sps:$4 sm:$0xff]  }
 0x23a   :  { %2130 = vmatmul.mubr.bf16.vlgmr.msra.gmra.mrb[12].mxu1 %v1558_v58 }
 0x23b   :  { %4035 = vmatpush3.bf16.msra.mxu1 %v4420_v57  ;;  %4050 = vmatprep.mubr.msk.bf16.mxu1 %vm4773_vm1, %v4772_v5 }
 0x23c   :  { %4036 = vmatprep.subr.bf16.mxu1 %v4772_v5  ;;  %2744 = vmatpush1.bf16.msra.mxu0 %v4452_v13  ;;  %v4507_v13 = vld [vmem:[#allocation7 + $0x1d0] ss:$12 sps:$4 sm:$0xff]  }
 0x23d   :  { %2745 = vmatprep.subr.bf16.mxu0 %v4459_v14  ;;  %v4510_v14 = vld [vmem:[#allocation7 + $0x1e4] ss:$12 sps:$4 sm:$0xff]  }
 0x23f   :  { %4037 = vmatpush3.bf16.msra.mxu1 %v4421_v59 }
 0x240   :  { %4038 = vmatprep.subr.bf16.mxu1 %v4772_v5  ;;  %2746 = vmatpush1.bf16.msra.mxu0 %v4457_v19  ;;  %v4514_v19 = vld [vmem:[#allocation7 + $0x1fc] ss:$12 sps:$4 sm:$0xff]  }
 0x241   :  { %2747 = vmatprep.subr.bf16.mxu0 %v4464_v20  ;;  %v4512_v20 = vld [vmem:[#allocation7 + $0x1f8] ss:$12 sps:$4 sm:$0xff]  }
 0x243   :  { %4039 = vmatpush3.bf16.msra.mxu1 %v4422_v60 }
 0x244   :  { %4040 = vmatprep.subr.bf16.mxu1 %v4772_v5  ;;  %2748 = vmatpush1.bf16.msra.mxu0 %v4462_v23  ;;  %v4518_v23 = vld [vmem:[#allocation7 + $0x214] ss:$12 sps:$4 sm:$0xff]  }
 0x245   :  { %2749 = vmatprep.subr.bf16.mxu0 %v4469_v15 }
 0x247   :  { %4041 = vmatpush3.bf16.msra.mxu1 %v4423_v61 }
 0x248   :  { %4042 = vmatprep.subr.bf16.mxu1 %v4772_v5  ;;  %2750 = vmatpush1.bf16.msra.mxu0 %v4467_v26 }
 0x249   :  { %2751 = vmatprep.subr.bf16.mxu0 %v4474_v27  ;;  %v4522_v27 = vld [vmem:[#allocation7 + $0x22c] ss:$12 sps:$4 sm:$0xff]  }
 0x24b   :  { %4043 = vmatpush3.bf16.msra.mxu1 %v4424_v62 }
 0x24c   :  { %4044 = vmatprep.subr.bf16.mxu1 %v4772_v5  ;;  %2752 = vmatpush1.bf16.msra.mxu0 %v4472_v30 }
 0x24d   :  { %2753 = vmatprep.subr.bf16.mxu0 %v4479_v31  ;;  %v4520_v31 = vld [vmem:[#allocation7 + $0x228] ss:$12 sps:$4 sm:$0xff]  }
 0x24f   :  { %4045 = vmatpush3.bf16.msra.mxu1 %v4425_v63  ;;  %v4492_v63 = vld [vmem:[#allocation7 + $0x180] ss:$12 sps:$4 sm:$0xff]  }
 0x250   :  { %4046 = vmatprep.subr.bf16.mxu1 %v4772_v5  ;;  %2754 = vmatpush1.bf16.msra.mxu0 %v4477_v33 }
 0x251   :  { %2755 = vmatprep.subr.bf16.mxu0 %v4484_v34  ;;  %v4523_v34 = vld [vmem:[#allocation7 + $0x230] ss:$12 sps:$4 sm:$0xff]  }
 0x253   :  { %4047 = vmatpush3.bf16.msra.mxu1 %v4426_v0  ;;  %v4495_v0 = vld [vmem:[#allocation7 + $0x188] ss:$12 sps:$4 sm:$0xff]  }
 0x254   :  { %4048 = vmatprep.subr.bf16.mxu1 %v4772_v5  ;;  %2756 = vmatpush1.bf16.msra.mxu0 %v4482_v36 }
 0x255   :  { %2757 = vmatprep.subr.bf16.mxu0 %v4489_v38  ;;  %v4524_v38 = vld [vmem:[#allocation9] ss:$8 sps:$4 sm:$0xff]  }
 0x257   :  { %4049 = vmatpush3.bf16.msra.mxu1 %v4427_v1 }
 0x258   :  { %3975 = vmatprep.subr.bf16.mxu1 %v4455_v10  ;;  %2758 = vmatpush1.bf16.msra.mxu0 %v4487_v40  ;;  %v4503_v10 = vld [vmem:[#allocation7 + $0x1b8] ss:$12 sps:$4 sm:$0xff]  }
 0x259   :  { %2768 = vmatprep.subr.bf16.mxu0 %v4494_v42  ;;  %v4527_v40 = vld [vmem:[#allocation9 + $0x10] ss:$8 sps:$4 sm:$0xff]   ;;  %v4530_v42 = vld [vmem:[#allocation9 + $0x20] ss:$8 sps:$4 sm:$0xff]  }
 0x25a   :  { %4051 = vmatmul.mubr.bf16.vlgmr.msra.gmra.mrb[16].mxu1 %v1558_v58 }
 0x25b   :  { %3976 = vmatpush3.bf16.msra.mxu1 %v4456_v11  ;;  %v4506_v11 = vld [vmem:[#allocation7 + $0x1cc] ss:$12 sps:$4 sm:$0xff]  }
 0x25c   :  { %3977 = vmatprep.subr.bf16.mxu1 %v4460_v12  ;;  %v4504_v12 = vld [vmem:[#allocation7 + $0x1c8] ss:$12 sps:$4 sm:$0xff]  }
 0x25f   :  { %3978 = vmatpush3.bf16.msra.mxu1 %v4461_v16  ;;  %v4508_v16 = vld [vmem:[#allocation7 + $0x1e0] ss:$12 sps:$4 sm:$0xff]  }
 0x260   :  { %3979 = vmatprep.subr.bf16.mxu1 %v4465_v17  ;;  %v4511_v17 = vld [vmem:[#allocation7 + $0x1e8] ss:$12 sps:$4 sm:$0xff]  }
 0x263   :  { %3980 = vmatpush3.bf16.msra.mxu1 %v4466_v21  ;;  %v4515_v21 = vld [vmem:[#allocation7 + $0x200] ss:$12 sps:$4 sm:$0xff]  }
 0x264   :  { %3981 = vmatprep.subr.bf16.mxu1 %v4470_v22  ;;  %v1668_v22 = vrot.slane %v4988_v48, %v4957_v52  ;;  %v4544_v48 = vld [vmem:[#allocation9 + $0x64] ss:$8 sps:$4 sm:$0xff]  }
 0x267   :  { %3982 = vmatpush3.bf16.msra.mxu1 %v4471_v24  ;;  %v4516_v24 = vld [vmem:[#allocation7 + $0x210] ss:$12 sps:$4 sm:$0xff]  }
 0x268   :  { %3983 = vmatprep.subr.bf16.mxu1 %v4475_v25  ;;  %v4519_v25 = vld [vmem:[#allocation7 + $0x218] ss:$12 sps:$4 sm:$0xff]  }
 0x26b   :  { %3984 = vmatpush3.bf16.msra.mxu1 %v4476_v28 }
 0x26c   :  { %3985 = vmatprep.subr.bf16.mxu1 %v4480_v29 }
 0x26f   :  { %3986 = vmatpush3.bf16.msra.mxu1 %v4481_v32 }
 0x270   :  { %3987 = vmatprep.subr.bf16.mxu1 %v4485_v35  ;;  %v4526_v35 = vld [vmem:[#allocation9 + $0x4] ss:$8 sps:$4 sm:$0xff]  }
 0x273   :  { %3988 = vmatpush3.bf16.msra.mxu1 %v4486_v37 }
 0x274   :  { %3989 = vmatprep.subr.bf16.mxu1 %v4490_v39  ;;  %v4529_v39 = vld [vmem:[#allocation9 + $0x14] ss:$8 sps:$4 sm:$0xff]  }
 0x277   :  { %3990 = vmatpush3.bf16.msra.mxu1 %v4491_v41  ;;  %v4532_v41 = vld [vmem:[#allocation9 + $0x24] ss:$8 sps:$4 sm:$0xff]  }
 0x278   :  { %4054 = vmatprep.subr.bf16.mxu1 %v4772_v5 }
 0x2ed   :  { %v3960_v43 = vpop.f32.mrb[8].mxu0 }
 0x2ee   :  { %v3961_v44 = vpop.f32.mrb[9].mxu0 }
 0x2ef   :  { %v4983_v45 = vadd.f32 %v3961_v44, %v3960_v43  ;;  %v3963_v46 = vpop.f32.mrb[10].mxu0  ;;  %v4535_v43 = vld [vmem:[#allocation9 + $0x34] ss:$8 sps:$4 sm:$0xff]   ;;  %v4538_v44 = vld [vmem:[#allocation9 + $0x44] ss:$8 sps:$4 sm:$0xff]  }
 0x2f0   :  { %v3964_v47 = vpop.f32.mrb[11].mxu0  ;;  %v4541_v46 = vld [vmem:[#allocation9 + $0x54] ss:$8 sps:$4 sm:$0xff]  }
 0x2f1   :  { %v2173_v15 = vadd.f32 %v4983_v45, %v1668_v22  ;;  %v4536_v45 = vld [vmem:[#allocation9 + $0x40] ss:$8 sps:$4 sm:$0xff]   ;;  %v4539_v47 = vld [vmem:[#allocation9 + $0x50] ss:$8 sps:$4 sm:$0xff]  }
 0x2f2   :  { %v4607_v22 = vld [vmem:[#allocation10 + $0x28] sm:$0xff]  }
 0x30d   :  { %v2131_v51 = vpop.f32.mrb[12].mxu1 }
 0x30e   :  { %v4076_v53 = vadd.f32 %v2131_v51, %v1660_v49  ;;  %v2133_v54 = vpop.f32.mrb[13].mxu1  ;;  %v4542_v49 = vld [vmem:[#allocation9 + $0x60] ss:$8 sps:$4 sm:$0xff]   ;;  %v4547_v51 = vld [vmem:[#allocation9 + $0x74] ss:$8 sps:$4 sm:$0xff]  }
 0x30f   :  { %v4077_v55 = vadd.f32 %v2133_v54, %v1664_v50  ;;  %v2135_v56 = vpop.f32.mrb[14].mxu1  ;;  %v4545_v50 = vld [vmem:[#allocation9 + $0x70] ss:$8 sps:$4 sm:$0xff]   ;;  %v4548_v54 = vld [vmem:[#allocation9 + $0x80] ss:$8 sps:$4 sm:$0xff]  }
 0x310   :  { %vm2218_vm5 = vcmp.gt.f32.partialorder %v4076_v53, 0.0  ;;  %v2221_v57 = vmul.f32 0.01, %v4076_v53  ;;  %v2136_v58 = vpop.f32.mrb[15].mxu1  ;;  %v4551_v56 = vld [vmem:[#allocation9 + $0x90] ss:$8 sps:$4 sm:$0xff]  }
 0x311   :  { %vm2219_vm6 = vcmp.gt.f32.partialorder %v4077_v55, 0.0  ;;  %v2222_v59 = vmul.f32 0.01, %v4077_v55  ;;  %v4554_v58 = vld [vmem:[#allocation9 + $0xa0] ss:$8 sps:$4 sm:$0xff]  }
 0x312   :  { %v2224_v60 = vsel %vm2218_vm5, %v4076_v53, %v2221_v57  ;;  %v4550_v53 = vld [vmem:[#allocation9 + $0x84] ss:$8 sps:$4 sm:$0xff]  }
 0x313   :  { %v2225_v61 = vsel %vm2219_vm6, %v4077_v55, %v2222_v59  ;;  %v2227_v1 = vpack.c.bf16 %v2224_v60, %v2224_v60  ;;  %v4553_v55 = vld [vmem:[#allocation9 + $0x94] ss:$8 sps:$4 sm:$0xff]   ;;  %v4556_v57 = vld [vmem:[#allocation9 + $0xa4] ss:$8 sps:$4 sm:$0xff]   ;;  %v4557_v60 = vld [vmem:[#allocation9 + $0xb0] ss:$8 sps:$4 sm:$0xff]  }
 0x314   :  { %v2228_v62 = vpack.c.bf16 %v2225_v61, %v2225_v61  ;;  %v4559_v59 = vld [vmem:[#allocation9 + $0xb4] ss:$8 sps:$4 sm:$0xff]   ;;  %v4562_v61 = vld [vmem:[#allocation9 + $0xc4] ss:$8 sps:$4 sm:$0xff]  }
 0x316   :  { %2759 = vmatprep.mubr.bf16.mxu0 %v2228_v62  ;;  %2841 = vmatprep.mubr.bf16.mxu1 %v2228_v62  ;;  %v4560_v62 = vld [vmem:[#allocation9 + $0xc0] ss:$8 sps:$4 sm:$0xff]  }
 0x317   :  { %2760 = vmatmul.mubr.bf16.vlgmr.msra.gmra.mrb[12].mxu0 %v2227_v1  ;;  %2842 = vmatmul.mubr.bf16.vlgmr.msra.gmra.mrb[20].mxu1 %v2227_v1  ;;  %v4568_v1 = vld [vmem:[#allocation9 + $0xe4] ss:$8 sps:$4 sm:$0xff]  }
 0x318   :  { %2769 = vmatpush1.bf16.msra.mxu0 %v4492_v63  ;;  %4055 = vmatpush3.bf16.msra.mxu1 %v4495_v0  ;;  %v4565_v63 = vld [vmem:[#allocation9 + $0xd4] ss:$8 sps:$4 sm:$0xff]   ;;  %v4563_v0 = vld [vmem:[#allocation9 + $0xd0] ss:$8 sps:$4 sm:$0xff]  }
 0x319   :  { %2770 = vmatprep.subr.bf16.mxu0 %v4498_v2  ;;  %4056 = vmatprep.subr.bf16.mxu1 %v4772_v5  ;;  %v4566_v2 = vld [vmem:[#allocation9 + $0xe0] ss:$8 sps:$4 sm:$0xff]  }
 0x31a   :  { %2800 = vmatprep.mubr.bf16.mxu0 %v4771_v4  ;;  %4070 = vmatprep.mubr.msk.bf16.mxu1 %vm4773_vm1, %v4772_v5 }
 0x31c   :  { %2771 = vmatpush1.bf16.msra.mxu0 %v4496_v3  ;;  %4057 = vmatpush3.bf16.msra.mxu1 %v4499_v6  ;;  %v4571_v3 = vld [vmem:[#allocation9 + $0xf4] ss:$8 sps:$4 sm:$0xff]   ;;  %v4569_v6 = vld [vmem:[#allocation9 + $0xf0] ss:$8 sps:$4 sm:$0xff]  }
 0x31d   :  { %2772 = vmatprep.subr.bf16.mxu0 %v4502_v18  ;;  %4058 = vmatprep.subr.bf16.mxu1 %v4772_v5  ;;  %v4574_v18 = vld [vmem:[#allocation9 + $0x104] ss:$8 sps:$4 sm:$0xff]  }
 0x320   :  { %2773 = vmatpush1.bf16.msra.mxu0 %v4500_v9  ;;  %4059 = vmatpush3.bf16.msra.mxu1 %v4503_v10  ;;  %v4596_v9 = vld [vmem:[#allocation10 + $0x40] sm:$0xff]  }
 0x321   :  { %2774 = vmatprep.subr.bf16.mxu0 %v4506_v11  ;;  %4060 = vmatprep.subr.bf16.mxu1 %v4772_v5  ;;  %v4597_v10 = vld [vmem:[#allocation10] sm:$0xff]   ;;  %v4598_v11 = vld [vmem:[#allocation10 + $0x48] sm:$0xff]  }
 0x324   :  { %2775 = vmatpush1.bf16.msra.mxu0 %v4504_v12  ;;  %4061 = vmatpush3.bf16.msra.mxu1 %v4507_v13  ;;  %v4599_v12 = vld [vmem:[#allocation10 + $0x8] sm:$0xff]   ;;  %v4600_v13 = vld [vmem:[#allocation10 + $0x50] sm:$0xff]  }
 0x325   :  { %2776 = vmatprep.subr.bf16.mxu0 %v4510_v14  ;;  %4062 = vmatprep.subr.bf16.mxu1 %v4772_v5  ;;  %v4601_v14 = vld [vmem:[#allocation10 + $0x10] sm:$0xff]  }
 0x328   :  { %2777 = vmatpush1.bf16.msra.mxu0 %v4508_v16  ;;  %4063 = vmatpush3.bf16.msra.mxu1 %v4511_v17  ;;  %v4602_v16 = vld [vmem:[#allocation10 + $0x58] sm:$0xff]  }
 0x329   :  { %2778 = vmatprep.subr.bf16.mxu0 %v4514_v19  ;;  %4064 = vmatprep.subr.bf16.mxu1 %v4772_v5  ;;  %v4603_v17 = vld [vmem:[#allocation10 + $0x18] sm:$0xff]   ;;  %v4604_v19 = vld [vmem:[#allocation10 + $0x60] sm:$0xff]  }
 0x32c   :  { %2779 = vmatpush1.bf16.msra.mxu0 %v4512_v20  ;;  %4065 = vmatpush3.bf16.msra.mxu1 %v4515_v21  ;;  %v4605_v20 = vld [vmem:[#allocation10 + $0x20] sm:$0xff]   ;;  %v4606_v21 = vld [vmem:[#allocation10 + $0x68] sm:$0xff]  }
 0x32d   :  { %v2212_v26 = vpop.f32.mrb[16].mxu1  ;;  %2780 = vmatprep.subr.bf16.mxu0 %v4518_v23  ;;  %4066 = vmatprep.subr.bf16.mxu1 %v4772_v5 }
 0x32e   :  { %v2213_v28 = vadd.f32 %v2212_v26, %v2173_v15  ;;  %v4052_v29 = vpop.f32.mrb[17].mxu1 }
 0x32f   :  { %v2215_v30 = vpop.f32.mrb[18].mxu1 }
 0x330   :  { %vm2220_vm7 = vcmp.gt.f32.partialorder %v2213_v28, 0.0  ;;  %v2223_v32 = vmul.f32 0.01, %v2213_v28  ;;  %2781 = vmatpush1.bf16.msra.mxu0 %v4516_v24  ;;  %4067 = vmatpush3.bf16.msra.mxu1 %v4519_v25  ;;  %v4053_v33 = vpop.f32.mrb[19].mxu1 }
 0x331   :  { %2782 = vmatprep.subr.bf16.mxu0 %v4522_v27  ;;  %4068 = vmatprep.subr.bf16.mxu1 %v4772_v5  ;;  %v4533_v5 = vld [vmem:[#allocation9 + $0x30] ss:$8 sps:$4 sm:$0xff]  }
 0x332   :  { %v2226_v36 = vsel %vm2220_vm7, %v2213_v28, %v2223_v32  ;;  %v2326_v27 = vld [vmem:[%s5031_s6] sm:$0x7] }
 0x333   :  { %v2229_v37 = vpack.c.bf16 %v2226_v36, %v2226_v36  ;;  %v2339_v28 = vrot.slane %v2326_v27, %v4957_v52  ;;  %v2331_v29 = vrot.slane %v2326_v27, %v4964_v7  ;;  %v2335_v30 = vrot.slane %v2326_v27, %v4967_v8 }
 0x334   :  { %2783 = vmatpush1.bf16.msra.mxu0 %v4520_v31  ;;  %4069 = vmatpush3.bf16.msra.mxu1 %v4523_v34 }
 0x335   :  { %3201 = vmatprep.subr.bf16.mxu1 %v4526_v35  ;;  %4006 = vmatprep.subr.bf16.mxu0 %v4596_v9 }
 0x337   :  { %2801 = vmatmul.mubr.bf16.vlgmr.msra.gmra.mrb[12].mxu0 %v2229_v37  ;;  %4071 = vmatmul.mubr.bf16.vlgmr.msra.gmra.mrb[24].mxu1 %v2229_v37 }
 0x338   :  { %3202 = vmatpush1.bf16.msra.mxu1 %v4524_v38  ;;  %4007 = vmatpush3.bf16.msra.mxu0 %v4597_v10 }
 0x339   :  { %3203 = vmatprep.subr.bf16.mxu1 %v4529_v39  ;;  %4008 = vmatprep.subr.bf16.mxu0 %v4598_v11 }
 0x33c   :  { %3204 = vmatpush1.bf16.msra.mxu1 %v4527_v40  ;;  %4009 = vmatpush3.bf16.msra.mxu0 %v4599_v12 }
 0x33d   :  { %3205 = vmatprep.subr.bf16.mxu1 %v4532_v41  ;;  %4010 = vmatprep.subr.bf16.mxu0 %v4600_v13 }
 0x340   :  { %3206 = vmatpush1.bf16.msra.mxu1 %v4530_v42  ;;  %4011 = vmatpush3.bf16.msra.mxu0 %v4601_v14 }
 0x341   :  { %3207 = vmatprep.subr.bf16.mxu1 %v4535_v43  ;;  %4012 = vmatprep.subr.bf16.mxu0 %v4602_v16 }
 0x344   :  { %3208 = vmatpush1.bf16.msra.mxu1 %v4533_v5  ;;  %4013 = vmatpush3.bf16.msra.mxu0 %v4603_v17 }
 0x345   :  { %3209 = vmatprep.subr.bf16.mxu1 %v4538_v44  ;;  %4014 = vmatprep.subr.bf16.mxu0 %v4604_v19 }
 0x348   :  { %3210 = vmatpush1.bf16.msra.mxu1 %v4536_v45  ;;  %4015 = vmatpush3.bf16.msra.mxu0 %v4605_v20 }
 0x349   :  { %3211 = vmatprep.subr.bf16.mxu1 %v4541_v46  ;;  %4016 = vmatprep.subr.bf16.mxu0 %v4606_v21  ;;  %v4572_v46 = vld [vmem:[#allocation9 + $0x100] ss:$8 sps:$4 sm:$0xff]  }
 0x34c   :  { %3212 = vmatpush1.bf16.msra.mxu1 %v4539_v47  ;;  %4017 = vmatpush3.bf16.msra.mxu0 %v4607_v22 }
 0x34d   :  { %3213 = vmatprep.subr.bf16.mxu1 %v4544_v48  ;;  %v4577_v48 = vld [vmem:[#allocation9 + $0x114] ss:$8 sps:$4 sm:$0xff]  }
 0x350   :  { %3214 = vmatpush1.bf16.msra.mxu1 %v4542_v49  ;;  %v4575_v49 = vld [vmem:[#allocation9 + $0x110] ss:$8 sps:$4 sm:$0xff]  }
 0x351   :  { %3215 = vmatprep.subr.bf16.mxu1 %v4547_v51  ;;  %v4578_v51 = vld [vmem:[#allocation9 + $0x120] ss:$8 sps:$4 sm:$0xff]  }
 0x354   :  { %3216 = vmatpush1.bf16.msra.mxu1 %v4545_v50  ;;  %v4580_v50 = vld [vmem:[#allocation9 + $0x124] ss:$8 sps:$4 sm:$0xff]  }
 0x355   :  { %3217 = vmatprep.subr.bf16.mxu1 %v4550_v53  ;;  %v4583_v53 = vld [vmem:[#allocation9 + $0x134] ss:$8 sps:$4 sm:$0xff]  }
 0x358   :  { %3218 = vmatpush1.bf16.msra.mxu1 %v4548_v54  ;;  %v4581_v54 = vld [vmem:[#allocation9 + $0x130] ss:$8 sps:$4 sm:$0xff]  }
 0x359   :  { %3219 = vmatprep.subr.bf16.mxu1 %v4553_v55  ;;  %v4586_v55 = vld [vmem:[#allocation9 + $0x144] ss:$8 sps:$4 sm:$0xff]  }
 0x35c   :  { %3220 = vmatpush1.bf16.msra.mxu1 %v4551_v56  ;;  %v4584_v56 = vld [vmem:[#allocation9 + $0x140] ss:$8 sps:$4 sm:$0xff]  }
 0x35d   :  { %3221 = vmatprep.subr.bf16.mxu1 %v4556_v57  ;;  %v4589_v57 = vld [vmem:[#allocation9 + $0x154] ss:$8 sps:$4 sm:$0xff]  }
 0x360   :  { %3222 = vmatpush1.bf16.msra.mxu1 %v4554_v58  ;;  %v4587_v58 = vld [vmem:[#allocation9 + $0x150] ss:$8 sps:$4 sm:$0xff]  }
 0x361   :  { %3223 = vmatprep.subr.bf16.mxu1 %v4559_v59  ;;  %v4592_v59 = vld [vmem:[#allocation9 + $0x164] ss:$8 sps:$4 sm:$0xff]  }
 0x364   :  { %3224 = vmatpush1.bf16.msra.mxu1 %v4557_v60  ;;  %v4595_v60 = vld [vmem:[#allocation9 + $0x174] ss:$8 sps:$4 sm:$0xff]  }
 0x365   :  { %3225 = vmatprep.subr.bf16.mxu1 %v4562_v61 }
 0x368   :  { %3226 = vmatpush1.bf16.msra.mxu1 %v4560_v62  ;;  %v4593_v62 = vld [vmem:[#allocation9 + $0x170] ss:$8 sps:$4 sm:$0xff]  }
 0x369   :  { %3227 = vmatprep.subr.bf16.mxu1 %v4565_v63 }
 0x36c   :  { %3228 = vmatpush1.bf16.msra.mxu1 %v4563_v0 }
 0x36d   :  { %3229 = vmatprep.subr.bf16.mxu1 %v4568_v1  ;;  %v4608_v1 = vld [vmem:[#allocation10 + $0x70] sm:$0xff]  }
 0x36e   :  { %4018 = vmatprep.subr.bf16.mxu0 %v4608_v1 }
 0x370   :  { %3230 = vmatpush1.bf16.msra.mxu1 %v4566_v2  ;;  %v4609_v2 = vld [vmem:[#allocation10 + $0x30] sm:$0xff]  }
 0x371   :  { %3231 = vmatprep.subr.bf16.mxu1 %v4571_v3  ;;  %4019 = vmatpush3.bf16.msra.mxu0 %v4609_v2  ;;  %v4610_v3 = vld [vmem:[#allocation10 + $0x78] sm:$0xff]  }
 0x372   :  { %4020 = vmatprep.subr.bf16.mxu0 %v4610_v3 }
 0x374   :  { %3232 = vmatpush1.bf16.msra.mxu1 %v4569_v6  ;;  %v4611_v6 = vld [vmem:[#allocation10 + $0x38] sm:$0xff]  }
 0x375   :  { %3242 = vmatprep.subr.bf16.mxu1 %v4574_v18  ;;  %4021 = vmatpush3.bf16.msra.mxu0 %v4611_v6  ;;  %v2949_v18 = vld [vmem:[%s5033_s8] sm:$0x3] }
 0x376   :  { %v2954_v9 = vrot.slane %v2949_v18, %v4964_v7  ;;  %v2958_v10 = vrot.slane %v2949_v18, %v4967_v8  ;;  %v3858_v7 = vld [vmem:[%s5035_s10] ss:$0 sm:$0xff] }
 0x3ea   :  { %v3991_v23 = vpop.f32.mrb[20].mxu1 }
 0x3eb   :  { %v3992_v15 = vpop.f32.mrb[21].mxu1 }
 0x3ec   :  { %v3993_v24 = vadd.f32 %v3992_v15, %v3991_v23  ;;  %v3994_v25 = vpop.f32.mrb[22].mxu1 }
 0x3ed   :  { %v3995_v26 = vpop.f32.mrb[23].mxu1 }
 0x3ee   :  { %v2844_v31 = vadd.f32 %v3993_v24, %v2339_v28 }
 0x40a   :  { %v2802_v32 = vpop.f32.mrb[12].mxu0  ;;  %v2883_v33 = vpop.f32.mrb[24].mxu1 }
 0x40b   :  { %v4078_v34 = vadd.f32 %v2802_v32, %v2331_v29  ;;  %v2884_v35 = vadd.f32 %v2883_v33, %v2844_v31  ;;  %v2804_v36 = vpop.f32.mrb[13].mxu0  ;;  %v4072_v37 = vpop.f32.mrb[25].mxu1 }
 0x40c   :  { %v4079_v38 = vadd.f32 %v2804_v36, %v2335_v30  ;;  %v2806_v39 = vpop.f32.mrb[14].mxu0  ;;  %v2886_v40 = vpop.f32.mrb[26].mxu1 }
 0x40d   :  { %vm2889_vm8 = vcmp.gt.f32.partialorder %v4078_v34, 0.0  ;;  %v2892_v41 = vmul.f32 0.01, %v4078_v34  ;;  %v2807_v43 = vpop.f32.mrb[15].mxu0  ;;  %v4073_v52 = vpop.f32.mrb[27].mxu1  ;;  %vm2891_vm10 = vcmp.gt.f32.partialorder %v2884_v35, 0.0 }
 0x40e   :  { %vm2890_vm9 = vcmp.gt.f32.partialorder %v4079_v38, 0.0  ;;  %v2893_v42 = vmul.f32 0.01, %v4079_v38  ;;  %v2894_v61 = vmul.f32 0.01, %v2884_v35 }
 0x40f   :  { %v2895_v5 = vsel %vm2889_vm8, %v4078_v34, %v2892_v41 }
 0x410   :  { %v2896_v44 = vsel %vm2890_vm9, %v4079_v38, %v2893_v42  ;;  %v2898_v47 = vpack.c.bf16 %v2895_v5, %v2895_v5  ;;  %v2897_v63 = vsel %vm2891_vm10, %v2884_v35, %v2894_v61 }
 0x411   :  { %v2899_v45 = vpack.c.bf16 %v2896_v44, %v2896_v44  ;;  %v2900_v0 = vpack.c.bf16 %v2897_v63, %v2897_v63 }
 0x413   :  { %3233 = vmatprep.mubr.bf16.mxu1 %v2899_v45 }
 0x414   :  { %3234 = vmatmul.mubr.bf16.vlgmr.msra.gmra.mrb[28].mxu1 %v2898_v47 }
 0x415   :  { %3243 = vmatpush1.bf16.msra.mxu1 %v4572_v46  ;;  %3274 = vmatprep.mubr.bf16.mxu1 %v4771_v4  ;;  %v4590_v4 = vld [vmem:[#allocation9 + $0x160] ss:$8 sps:$4 sm:$0xff]  }
 0x416   :  { %3244 = vmatprep.subr.bf16.mxu1 %v4577_v48 }
 0x419   :  { %3245 = vmatpush1.bf16.msra.mxu1 %v4575_v49 }
 0x41a   :  { %3246 = vmatprep.subr.bf16.mxu1 %v4580_v50 }
 0x41d   :  { %3247 = vmatpush1.bf16.msra.mxu1 %v4578_v51 }
 0x41e   :  { %3248 = vmatprep.subr.bf16.mxu1 %v4583_v53 }
 0x421   :  { %3249 = vmatpush1.bf16.msra.mxu1 %v4581_v54 }
 0x422   :  { %3250 = vmatprep.subr.bf16.mxu1 %v4586_v55 }
 0x425   :  { %3251 = vmatpush1.bf16.msra.mxu1 %v4584_v56 }
 0x426   :  { %3252 = vmatprep.subr.bf16.mxu1 %v4589_v57 }
 0x429   :  { %3253 = vmatpush1.bf16.msra.mxu1 %v4587_v58 }
 0x42a   :  { %3254 = vmatprep.subr.bf16.mxu1 %v4592_v59 }
 0x42d   :  { %3255 = vmatpush1.bf16.msra.mxu1 %v4590_v4 }
 0x42e   :  { %3256 = vmatprep.subr.bf16.mxu1 %v4595_v60 }
 0x431   :  { %3257 = vmatpush1.bf16.msra.mxu1 %v4593_v62 }
 0x434   :  { %3275 = vmatmul.mubr.bf16.vlgmr.msra.gmra.mrb[28].mxu1 %v2900_v0 }
 0x507   :  { %v3276_v11 = vpop.f32.mrb[28].mxu1 }
 0x508   :  { %v4080_v12 = vadd.f32 %v3276_v11, %v2954_v9  ;;  %v3278_v13 = vpop.f32.mrb[29].mxu1 }
 0x509   :  { %v4081_v14 = vadd.f32 %v3278_v13, %v2958_v10  ;;  %v3280_v16 = vpop.f32.mrb[30].mxu1 }
 0x50a   :  { %vm3283_vm11 = vcmp.gt.f32.partialorder %v4080_v12, 0.0  ;;  %v3285_v17 = vmul.f32 0.01, %v4080_v12  ;;  %v3281_v19 = vpop.f32.mrb[31].mxu1 }
 0x50b   :  { %vm3284_vm12 = vcmp.gt.f32.partialorder %v4081_v14, 0.0  ;;  %v3286_v20 = vmul.f32 0.01, %v4081_v14 }
 0x50c   :  { %v3287_v21 = vsel %vm3283_vm11, %v4080_v12, %v3285_v17 }
 0x50d   :  { %v3288_v22 = vsel %vm3284_vm12, %v4081_v14, %v3286_v20  ;;  %v3289_v15 = vpack.c.bf16 %v3287_v21, %v3287_v21 }
 0x50e   :  { %v3290_v23 = vpack.c.bf16 %v3288_v22, %v3288_v22 }
 0x510   :  { %3458 = vmatprep.mubr.bf16.mxu0 %v3290_v23 }
 0x511   :  { %3459 = vmatmul.mubr.bf16.vlgmr.msra.gmra.mrb[16].mxu0 %v3289_v15 }
 0x5e4   :  { %v4022_v24 = vpop.f32.mrb[16].mxu0 }
 0x5e5   :  { %v4023_v8 = vpop.f32.mrb[17].mxu0 }
 0x5e6   :  { %v4024_v25 = vadd.f32 %v4023_v8, %v4022_v24  ;;  %v4025_v26 = vpop.f32.mrb[18].mxu0 }
 0x5e7   :  { %v4026_v27 = vpop.f32.mrb[19].mxu0 }
 0x5e8   :  { %v3461_v28 = vadd.f32 %v4024_v25, %v3858_v7 }
 0x5ea   :  { %v3875_v29 = vmul.f32 -1.442695, %v3461_v28 }
 0x5ec   :  { %4612 = vpow2.f32 %v3875_v29 }
 0x5f6   :  { %v4613_v30 = vpop.eup %4612 }
 0x5f7   :  { %v3469_v31 = vadd.f32 1.0, %v4613_v30 }
 0x5f9   :  { %4614 = vrcp.f32 %v3469_v31 }
 0x603   :  { %v4615_v32 = vpop.eup %4614 }
 0x604   :  { %3473 = vst.msk [vmem:[#allocation12] sm:$0xff] %vm3472_vm13, %v4615_v32 }
 0x60b   :  { %v3491_v33 = vld [vmem:[#allocation12] sm:$0x3] }
 0x60c   :  { %3492 = vst [vmem:[%s5036_s11] sm:$0x3] %v3491_v33 }
 0x60d   :  { %3509 = vsyncpa [#allocation3], 1 }
 0x60e   :  { %3510 = vsyncpa [#allocation5], 1 }
 0x60f   :  { %3511 = vsyncpa [#allocation8], 1 }
 0x610   :  { %3512 = vsyncpa [#allocation11], 1 }

</bundles_post_ra>
